<compile_context>
chip_gen: v7x
topology: tpu7x:2x2x1
jax: 0.10.0
libtpu: 0.0.40
codegen_flags: <defaults>
</compile_context>

<pallas_src>
import functools

import jax
import jax.numpy as jnp
from jax import lax
from jax.experimental import pallas as pl
from jax.experimental.pallas import tpu as pltpu

FEAT_LEN = 32
BN_EPS = 1e-5
TILE_TARGET = 8192                # rows per tile (4-8k amortizes per-step cost)
VMEM_LIMIT = 48 * 1024 * 1024     # scoped VMEM budget (safe on v5e/v6e/v7x)


def _row_tile(m, target=TILE_TARGET):
    """Row-tile size: <= target, a multiple of 8 (or the full extent for tiny
    m); when the work is big enough to split, produce an even tile count so the
    "parallel" grid axis balances across v7x's two TensorCores."""
    if m <= 1024:
        return m
    pairs = -(-m // (2 * target))          # ceil(m / (2*target)) >= 1
    tile = -(-m // (2 * pairs))            # 2*pairs tiles cover m
    return -(-tile // 8) * 8               # round up to sublane multiple


# ----------------------------------------------------------------------------- kernels

def _masked_rows(y, tile, total):
    """Zero out rows of a partial last tile so they don't pollute BN stats."""
    if total % tile == 0:
        return y
    rows = pl.program_id(0) * tile + lax.broadcasted_iota(jnp.int32, y.shape, 0)
    return jnp.where(rows < total, y, 0.0)


def _x_moments_kernel(x_ref, s_ref, r0_ref, r1_ref, r2_ref, *, m_total, tile_m):
    # Tiny moments of x needed for the analytic bn1 fold:
    #   s  = sum_m x_m            (1, 3)
    #   r_i = sum_m x_m * x_m[i]  (rows of sum_m x_m x_m^T)
    x = x_ref[...]                                              # (tile_m, 3)
    if m_total % tile_m != 0:
        rows = (pl.program_id(0) * tile_m
                + lax.broadcasted_iota(jnp.int32, x.shape, 0))
        x = jnp.where(rows < m_total, x, 0.0)
    s_ref[0] = jnp.sum(x, axis=0, keepdims=True)
    r0_ref[0] = jnp.sum(x * x[:, 0:1], axis=0, keepdims=True)
    r1_ref[0] = jnp.sum(x * x[:, 1:2], axis=0, keepdims=True)
    r2_ref[0] = jnp.sum(x * x[:, 2:3], axis=0, keepdims=True)


def _conv12_kernel(x_ref, sc1_ref, w1_ref, w2_ref, y_ref, s_ref, ss_ref,
                   *, m_total, tile_m):
    # conv1 -> bn1(+relu) folded to an FMA (scale/shift precomputed from the x
    # moments) -> conv2; emits y2 and its partial bn2 statistics.  y1 never
    # touches HBM.  conv biases are cancelled by the BN mean subtraction.
    h = jnp.dot(x_ref[...], w1_ref[...], preferred_element_type=jnp.float32)
    a = jnp.maximum(h * sc1_ref[0:1, :] + sc1_ref[1:2, :], 0.0)
    y = jnp.dot(a, w2_ref[...], preferred_element_type=jnp.float32)
    y_ref[...] = y
    ym = _masked_rows(y, tile_m, m_total)
    s_ref[0] = jnp.sum(ym, axis=0, keepdims=True)
    ss_ref[0] = jnp.sum(ym * ym, axis=0, keepdims=True)


def _bn_relu_conv_kernel(y_ref, sc_ref, w_ref, o_ref, s_ref, ss_ref,
                         *, m_total, tile_m):
    # relu(bn_prev(y_prev)) as an FMA -> conv; emits output + partial BN stats.
    a = jnp.maximum(y_ref[...] * sc_ref[0:1, :] + sc_ref[1:2, :], 0.0)
    y = jnp.dot(a, w_ref[...], preferred_element_type=jnp.float32)
    o_ref[...] = y
    ym = _masked_rows(y, tile_m, m_total)
    s_ref[0] = jnp.sum(ym, axis=0, keepdims=True)
    ss_ref[0] = jnp.sum(ym * ym, axis=0, keepdims=True)


def _conv4_pool_kernel(y_ref, sc_ref, w_ref, s_ref, ss_ref, mx_ref, mn_ref,
                       *, n_total, tile_n):
    # relu(bn3) FMA -> conv4; emits partial bn4 stats AND per-tile per-channel
    # max/min of pre-BN y4.  Since relu(s*y+t) is monotone in y per channel,
    # the per-example pooled feature is recovered in O(B*C) glue and y4 is
    # never written to HBM.  Tiles never straddle example boundaries
    # (grid = (B, N/tile)).
    a = jnp.maximum(y_ref[0] * sc_ref[0:1, :] + sc_ref[1:2, :], 0.0)
    y = jnp.dot(a, w_ref[...], preferred_element_type=jnp.float32)
    if n_total % tile_n != 0:
        rows = (pl.program_id(1) * tile_n
                + lax.broadcasted_iota(jnp.int32, y.shape, 0))
        valid = rows < n_total
        ys = jnp.where(valid, y, 0.0)
        ymx = jnp.where(valid, y, -jnp.inf)
        ymn = jnp.where(valid, y, jnp.inf)
    else:
        ys = ymx = ymn = y
    s_ref[0] = jnp.sum(ys, axis=0, keepdims=True)
    ss_ref[0] = jnp.sum(ys * ys, axis=0, keepdims=True)
    mx_ref[0] = jnp.max(ymx, axis=0, keepdims=True)
    mn_ref[0] = jnp.min(ymn, axis=0, keepdims=True)


def _head_kernel(p_ref, wm_ref, gb_ref, o_ref):
    # mlp1 (128 -> F, bias cancelled by bn6) + bn6 (train-mode over B) + relu.
    y = jnp.dot(p_ref[...], wm_ref[...], preferred_element_type=jnp.float32)
    bsz = y.shape[0]
    mean = jnp.sum(y, axis=0, keepdims=True) / bsz
    var = jnp.maximum(jnp.sum(y * y, axis=0, keepdims=True) / bsz - mean * mean, 0.0)
    scale = gb_ref[0:1, :] * lax.rsqrt(var + BN_EPS)
    shift = gb_ref[1:2, :] - mean * scale
    o_ref[...] = jnp.maximum(y * scale + shift, 0.0)


# ----------------------------------------------------------------------------- wrappers

def _compiler_params(semantics):
    return pltpu.CompilerParams(dimension_semantics=semantics,
                                vmem_limit_bytes=VMEM_LIMIT)


def _x_moments(x_flat):
    m, _ = x_flat.shape
    tile_m = _row_tile(m)
    n_tiles = pl.cdiv(m, tile_m)
    stat_spec = pl.BlockSpec((1, 1, 3), lambda i: (i, 0, 0))
    stat_shape = jax.ShapeDtypeStruct((n_tiles, 1, 3), jnp.float32)
    return pl.pallas_call(
        functools.partial(_x_moments_kernel, m_total=m, tile_m=tile_m),
        grid=(n_tiles,),
        in_specs=[pl.BlockSpec((tile_m, 3), lambda i: (i, 0))],
        out_specs=[stat_spec] * 4,
        out_shape=[stat_shape] * 4,
        compiler_params=_compiler_params(("parallel",)),
    )(x_flat)


def _conv12(x_flat, sc1, w1, w2):
    m = x_flat.shape[0]
    cout = w2.shape[1]
    tile_m = _row_tile(m)
    n_tiles = pl.cdiv(m, tile_m)
    y, s, ss = pl.pallas_call(
        functools.partial(_conv12_kernel, m_total=m, tile_m=tile_m),
        grid=(n_tiles,),
        in_specs=[pl.BlockSpec((tile_m, 3), lambda i: (i, 0)),
                  pl.BlockSpec((2, w1.shape[1]), lambda i: (0, 0)),
                  pl.BlockSpec((3, w1.shape[1]), lambda i: (0, 0)),
                  pl.BlockSpec((w2.shape[0], cout), lambda i: (0, 0))],
        out_specs=[pl.BlockSpec((tile_m, cout), lambda i: (i, 0)),
                   pl.BlockSpec((1, 1, cout), lambda i: (i, 0, 0)),
                   pl.BlockSpec((1, 1, cout), lambda i: (i, 0, 0))],
        out_shape=[jax.ShapeDtypeStruct((m, cout), jnp.float32),
                   jax.ShapeDtypeStruct((n_tiles, 1, cout), jnp.float32),
                   jax.ShapeDtypeStruct((n_tiles, 1, cout), jnp.float32)],
        compiler_params=_compiler_params(("parallel",)),
    )(x_flat, sc1, w1, w2)
    return y, s, ss


def _bn_relu_conv(y_prev, sc_prev, w):
    m, cin = y_prev.shape
    cout = w.shape[1]
    tile_m = _row_tile(m)
    n_tiles = pl.cdiv(m, tile_m)
    y, s, ss = pl.pallas_call(
        functools.partial(_bn_relu_conv_kernel, m_total=m, tile_m=tile_m),
        grid=(n_tiles,),
        in_specs=[pl.BlockSpec((tile_m, cin), lambda i: (i, 0)),
                  pl.BlockSpec((2, cin), lambda i: (0, 0)),
                  pl.BlockSpec((cin, cout), lambda i: (0, 0))],
        out_specs=[pl.BlockSpec((tile_m, cout), lambda i: (i, 0)),
                   pl.BlockSpec((1, 1, cout), lambda i: (i, 0, 0)),
                   pl.BlockSpec((1, 1, cout), lambda i: (i, 0, 0))],
        out_shape=[jax.ShapeDtypeStruct((m, cout), jnp.float32),
                   jax.ShapeDtypeStruct((n_tiles, 1, cout), jnp.float32),
                   jax.ShapeDtypeStruct((n_tiles, 1, cout), jnp.float32)],
        compiler_params=_compiler_params(("parallel",)),
    )(y_prev, sc_prev, w)
    return y, s, ss


def _conv4_pool_stats(y3, sc3, w4, B, N):
    cin = y3.shape[1]
    cout = w4.shape[1]
    tile_n = _row_tile(N)
    n_tiles = pl.cdiv(N, tile_n)
    stat_spec = pl.BlockSpec((1, 1, cout), lambda b, t: (b * n_tiles + t, 0, 0))
    stat_shape = jax.ShapeDtypeStruct((B * n_tiles, 1, cout), jnp.float32)
    s, ss, mx, mn = pl.pallas_call(
        functools.partial(_conv4_pool_kernel, n_total=N, tile_n=tile_n),
        grid=(B, n_tiles),
        in_specs=[pl.BlockSpec((1, tile_n, cin), lambda b, t: (b, t, 0)),
                  pl.BlockSpec((2, cin), lambda b, t: (0, 0)),
                  pl.BlockSpec((cin, cout), lambda b, t: (0, 0))],
        out_specs=[stat_spec] * 4,
        out_shape=[stat_shape] * 4,
        compiler_params=_compiler_params(("parallel", "parallel")),
    )(y3.reshape(B, N, cin), sc3, w4)
    rs = lambda a: a.reshape(B, n_tiles, cout)
    return rs(s), rs(ss), rs(mx), rs(mn)


def _head(pooled, wm, g6, be6):
    B = pooled.shape[0]
    feat = wm.shape[1]
    gb6 = jnp.concatenate([g6, be6], axis=0)                # (2, F) packed params
    return pl.pallas_call(
        _head_kernel,
        in_specs=[pl.BlockSpec(memory_space=pltpu.MemorySpace.VMEM)] * 3,
        out_specs=pl.BlockSpec(memory_space=pltpu.MemorySpace.VMEM),
        out_shape=jax.ShapeDtypeStruct((B, feat), jnp.float32),
        compiler_params=pltpu.CompilerParams(vmem_limit_bytes=VMEM_LIMIT),
    )(pooled, wm, gb6)


# ----------------------------------------------------------------------------- O(C) glue

def _fold_bn(s_parts, ss_parts, gamma, beta, count):
    """Reduce per-tile sums and fold train-mode BN + affine into (scale, shift)."""
    s = jnp.sum(s_parts, axis=(0, 1))                       # (C,)
    ss = jnp.sum(ss_parts, axis=(0, 1))
    mean = s / count
    var = jnp.maximum(ss / count - mean * mean, 0.0)        # biased (one-pass) variance
    scale = gamma.reshape(-1) * lax.rsqrt(var + BN_EPS)
    shift = beta.reshape(-1) - mean * scale
    return jnp.stack([scale, shift], axis=0)                # (2, C)


def _fold_bn1_from_x_moments(xs, xr0, xr1, xr2, w1, gamma, beta, count):
    """bn1 fold without materializing y1: y1 = x @ W1 is linear, so
    mean1 = mean_x @ W1 and E[y1_c^2] = w_c^T E[x x^T] w_c (bias cancels)."""
    mean_x = jnp.sum(xs, axis=(0, 1)) / count               # (3,)
    exx = jnp.stack([jnp.sum(r, axis=(0, 1)) for r in (xr0, xr1, xr2)],
                    axis=0) / count                         # (3, 3) = E[x x^T]
    mean1 = mean_x @ w1                                     # (C,)
    ey2 = jnp.sum(w1 * (exx @ w1), axis=0)                  # (C,) = w_c^T E[xx^T] w_c
    var = jnp.maximum(ey2 - mean1 * mean1, 0.0)
    scale = gamma.reshape(-1) * lax.rsqrt(var + BN_EPS)
    shift = beta.reshape(-1) - mean1 * scale
    return jnp.stack([scale, shift], axis=0)                # (2, C)


def _fold_bn4_and_pool(s4, ss4, mx4, mn4, gamma, beta, count):
    """Fold bn4 and recover max_n relu(bn4(y4)) per example from per-tile
    (sum, sumsq, max, min): relu(s*y + t) is monotone in y per channel."""
    s = jnp.sum(s4, axis=(0, 1))                            # (C,)
    ss = jnp.sum(ss4, axis=(0, 1))
    mx = jnp.max(mx4, axis=1)                               # (B, C)
    mn = jnp.min(mn4, axis=1)                               # (B, C)
    mean = s / count
    var = jnp.maximum(ss / count - mean * mean, 0.0)
    scale = gamma.reshape(-1) * lax.rsqrt(var + BN_EPS)
    shift = beta.reshape(-1) - mean * scale
    extreme = jnp.where(scale >= 0.0, scale * mx, scale * mn)
    return jnp.maximum(extreme + shift, 0.0)                # (B, C) pooled


# ----------------------------------------------------------------------------- model

def part_pointnet(x, params):
    """x: (B, N, 3) float32 points. params: flat list (see init_params).
    Returns (B, FEAT_LEN), matching the PyTorch training-mode forward."""
    (w1, _b1, g1, be1,
     w2, _b2, g2, be2,
     w3, _b3, g3, be3,
     w4, _b4, g4, be4,
     wm, _bm, g6, be6) = params
    # conv/linear biases (_b*) are mathematically cancelled by the BN mean
    # subtraction that immediately follows each layer -> intentionally unused.
    B, N, _ = x.shape
    M = B * N
    x_flat = x.reshape(M, 3)

    xs, xr0, xr1, xr2 = _x_moments(x_flat)                  # tiny (M,3) pre-pass
    sc1 = _fold_bn1_from_x_moments(xs, xr0, xr1, xr2, w1, g1, be1, M)

    y2, s2, q2 = _conv12(x_flat, sc1, w1, w2)               # conv1+bn1+relu+conv2
    sc2 = _fold_bn(s2, q2, g2, be2, M)

    y3, s3, q3 = _bn_relu_conv(y2, sc2, w3)                 # bn2+relu+conv3
    sc3 = _fold_bn(s3, q3, g3, be3, M)

    s4, q4, mx4, mn4 = _conv4_pool_stats(y3, sc3, w4, B, N)  # bn3+relu+conv4+pool
    pooled = _fold_bn4_and_pool(s4, q4, mx4, mn4, g4, be4, M)  # (B, 128)

    return _head(pooled, wm, g6, be6)                       # (B, FEAT_LEN)


def init_params(key, feat_len=FEAT_LEN):
    """Deterministic synthetic parameters mirroring the PyTorch module.
    Conv/Linear weights stored transposed as (Cin, Cout); biases kept for
    layout fidelity but unused (cancelled by training-mode BatchNorm)."""
    dims = [(3, 64), (64, 64), (64, 64), (64, 128), (128, feat_len)]
    params = []
    keys = jax.random.split(key, len(dims))
    for (cin, cout), k in zip(dims, keys):
        kw, kb, kg, kbe = jax.random.split(k, 4)
        w = jax.random.normal(kw, (cin, cout), jnp.float32) * (1.0 / cin) ** 0.5
        b = 0.1 * jax.random.normal(kb, (1, cout), jnp.float32)
        g = 1.0 + 0.1 * jax.random.normal(kg, (1, cout), jnp.float32)   # BN gamma
        be = 0.1 * jax.random.normal(kbe, (1, cout), jnp.float32)       # BN beta
        params += [w, b, g, be]
    return params


if __name__ == "__main__":
    key = jax.random.PRNGKey(0)
    k_x, k_p = jax.random.split(key)

    B, N = 2, 16
    x = jax.random.normal(k_x, (B, N, 3), dtype=jnp.float32)
    params = init_params(k_p, FEAT_LEN)

    out = jax.jit(part_pointnet)(x, params)
    jax.block_until_ready(out)
    assert out.shape == (B, FEAT_LEN)
    assert bool(jnp.all(jnp.isfinite(out)))
    assert bool(jnp.all(out >= 0.0))   # final ReLU
    print("KERNEL_OK")
</pallas_src>

<mosaic_0001>
module attributes {stable_mosaic.version = 11 : i64} {
  func.func @_x_moments_kernel(%arg0: i32, %arg1: memref<32x3xf32, #tpu.memory_space<vmem>>, %arg2: memref<1x1x3xf32, #tpu.memory_space<vmem>>, %arg3: memref<1x1x3xf32, #tpu.memory_space<vmem>>, %arg4: memref<1x1x3xf32, #tpu.memory_space<vmem>>, %arg5: memref<1x1x3xf32, #tpu.memory_space<vmem>>) attributes {dimension_semantics = [#tpu.dimension_semantics<parallel>], iteration_bounds = array<i64: 1>, scalar_prefetch = 0 : i64, scratch_operands = 0 : i64, tpu.core_type = #tpu.core_type<tc>, window_params = [{transform_indices = @transform_0, window_bounds = array<i64: 32, 3>}, {transform_indices = @transform_1, window_bounds = array<i64: 1, 1, 3>}, {transform_indices = @transform_2, window_bounds = array<i64: 1, 1, 3>}, {transform_indices = @transform_3, window_bounds = array<i64: 1, 1, 3>}, {transform_indices = @transform_4, window_bounds = array<i64: 1, 1, 3>}]} {
    %c0 = arith.constant 0 : index
    %c0_0 = arith.constant 0 : index
    %0 = vector.load %arg1[%c0, %c0_0] : memref<32x3xf32, #tpu.memory_space<vmem>>, vector<32x3xf32>
    %cst = arith.constant dense<0.000000e+00> : vector<3xf32>
    %1 = vector.multi_reduction <add>, %0, %cst [0] : vector<32x3xf32> to vector<3xf32>
    %2 = vector.shape_cast %1 : vector<3xf32> to vector<1x3xf32>
    %c0_1 = arith.constant 0 : index
    %c0_2 = arith.constant 0 : index
    %c0_3 = arith.constant 0 : index
    %3 = vector.load %arg2[%c0_1, %c0_2, %c0_3] : memref<1x1x3xf32, #tpu.memory_space<vmem>>, vector<1x1x3xf32>
    %4 = vector.shape_cast %3 : vector<1x1x3xf32> to vector<1x3xf32>
    %5 = vector.shape_cast %2 : vector<1x3xf32> to vector<1x1x3xf32>
    tpu.vector_store %arg2[%c0_1, %c0_2, %c0_3], %5 {strides = array<i32>} : memref<1x1x3xf32, #tpu.memory_space<vmem>>, vector<1x1x3xf32>,
    %6 = vector.extract_strided_slice %0 {offsets = [0, 0], sizes = [32, 1], strides = [1, 1]} : vector<32x3xf32> to vector<32x1xf32>
    %7 = vector.broadcast %6 : vector<32x1xf32> to vector<32x3xf32>
    %8 = arith.mulf %0, %7 : vector<32x3xf32>
    %cst_4 = arith.constant dense<0.000000e+00> : vector<3xf32>
    %9 = vector.multi_reduction <add>, %8, %cst_4 [0] : vector<32x3xf32> to vector<3xf32>
    %10 = vector.shape_cast %9 : vector<3xf32> to vector<1x3xf32>
    %c0_5 = arith.constant 0 : index
    %c0_6 = arith.constant 0 : index
    %c0_7 = arith.constant 0 : index
    %11 = vector.load %arg3[%c0_5, %c0_6, %c0_7] : memref<1x1x3xf32, #tpu.memory_space<vmem>>, vector<1x1x3xf32>
    %12 = vector.shape_cast %11 : vector<1x1x3xf32> to vector<1x3xf32>
    %13 = vector.shape_cast %10 : vector<1x3xf32> to vector<1x1x3xf32>
    tpu.vector_store %arg3[%c0_5, %c0_6, %c0_7], %13 {strides = array<i32>} : memref<1x1x3xf32, #tpu.memory_space<vmem>>, vector<1x1x3xf32>,
    %14 = vector.extract_strided_slice %0 {offsets = [0, 1], sizes = [32, 1], strides = [1, 1]} : vector<32x3xf32> to vector<32x1xf32>
    %15 = vector.broadcast %14 : vector<32x1xf32> to vector<32x3xf32>
    %16 = arith.mulf %0, %15 : vector<32x3xf32>
    %cst_8 = arith.constant dense<0.000000e+00> : vector<3xf32>
    %17 = vector.multi_reduction <add>, %16, %cst_8 [0] : vector<32x3xf32> to vector<3xf32>
    %18 = vector.shape_cast %17 : vector<3xf32> to vector<1x3xf32>
    %c0_9 = arith.constant 0 : index
    %c0_10 = arith.constant 0 : index
    %c0_11 = arith.constant 0 : index
    %19 = vector.load %arg4[%c0_9, %c0_10, %c0_11] : memref<1x1x3xf32, #tpu.memory_space<vmem>>, vector<1x1x3xf32>
    %20 = vector.shape_cast %19 : vector<1x1x3xf32> to vector<1x3xf32>
    %21 = vector.shape_cast %18 : vector<1x3xf32> to vector<1x1x3xf32>
    tpu.vector_store %arg4[%c0_9, %c0_10, %c0_11], %21 {strides = array<i32>} : memref<1x1x3xf32, #tpu.memory_space<vmem>>, vector<1x1x3xf32>,
    %22 = vector.extract_strided_slice %0 {offsets = [0, 2], sizes = [32, 1], strides = [1, 1]} : vector<32x3xf32> to vector<32x1xf32>
    %23 = vector.broadcast %22 : vector<32x1xf32> to vector<32x3xf32>
    %24 = arith.mulf %0, %23 : vector<32x3xf32>
    %cst_12 = arith.constant dense<0.000000e+00> : vector<3xf32>
    %25 = vector.multi_reduction <add>, %24, %cst_12 [0] : vector<32x3xf32> to vector<3xf32>
    %26 = vector.shape_cast %25 : vector<3xf32> to vector<1x3xf32>
    %c0_13 = arith.constant 0 : index
    %c0_14 = arith.constant 0 : index
    %c0_15 = arith.constant 0 : index
    %27 = vector.load %arg5[%c0_13, %c0_14, %c0_15] : memref<1x1x3xf32, #tpu.memory_space<vmem>>, vector<1x1x3xf32>
    %28 = vector.shape_cast %27 : vector<1x1x3xf32> to vector<1x3xf32>
    %29 = vector.shape_cast %26 : vector<1x3xf32> to vector<1x1x3xf32>
    tpu.vector_store %arg5[%c0_13, %c0_14, %c0_15], %29 {strides = array<i32>} : memref<1x1x3xf32, #tpu.memory_space<vmem>>, vector<1x1x3xf32>,
    return
  }
  func.func @transform_0(%arg0: i32) -> (i32, i32) {
    %c0_i32 = arith.constant 0 : i32
    %c0_i32_0 = arith.constant 0 : i32
    return %arg0, %c0_i32 : i32, i32
  }
  func.func @transform_1(%arg0: i32) -> (i32, i32, i32) {
    %c0_i32 = arith.constant 0 : i32
    %c0_i32_0 = arith.constant 0 : i32
    %c0_i32_1 = arith.constant 0 : i32
    return %arg0, %c0_i32, %c0_i32_0 : i32, i32, i32
  }
  func.func @transform_2(%arg0: i32) -> (i32, i32, i32) {
    %c0_i32 = arith.constant 0 : i32
    %c0_i32_0 = arith.constant 0 : i32
    %c0_i32_1 = arith.constant 0 : i32
    return %arg0, %c0_i32, %c0_i32_0 : i32, i32, i32
  }
  func.func @transform_3(%arg0: i32) -> (i32, i32, i32) {
    %c0_i32 = arith.constant 0 : i32
    %c0_i32_0 = arith.constant 0 : i32
    %c0_i32_1 = arith.constant 0 : i32
    return %arg0, %c0_i32, %c0_i32_0 : i32, i32, i32
  }
  func.func @transform_4(%arg0: i32) -> (i32, i32, i32) {
    %c0_i32 = arith.constant 0 : i32
    %c0_i32_0 = arith.constant 0 : i32
    %c0_i32_1 = arith.constant 0 : i32
    return %arg0, %c0_i32, %c0_i32_0 : i32, i32, i32
  }
}

module attributes {stable_mosaic.version = 11 : i64} {
  func.func @_bn_relu_conv_kernel(%arg0: i32, %arg1: memref<32x64xf32, #tpu.memory_space<vmem>>, %arg2: memref<2x64xf32, #tpu.memory_space<vmem>>, %arg3: memref<64x64xf32, #tpu.memory_space<vmem>>, %arg4: memref<32x64xf32, #tpu.memory_space<vmem>>, %arg5: memref<1x1x64xf32, #tpu.memory_space<vmem>>, %arg6: memref<1x1x64xf32, #tpu.memory_space<vmem>>) attributes {dimension_semantics = [#tpu.dimension_semantics<parallel>], iteration_bounds = array<i64: 1>, scalar_prefetch = 0 : i64, scratch_operands = 0 : i64, tpu.core_type = #tpu.core_type<tc>, window_params = [{transform_indices = @transform_0, window_bounds = array<i64: 32, 64>}, {pipeline_mode = #tpu.pipeline_mode<synchronous>, transform_indices = @transform_1, window_bounds = array<i64: 2, 64>}, {pipeline_mode = #tpu.pipeline_mode<synchronous>, transform_indices = @transform_2, window_bounds = array<i64: 64, 64>}, {transform_indices = @transform_3, window_bounds = array<i64: 32, 64>}, {transform_indices = @transform_4, window_bounds = array<i64: 1, 1, 64>}, {transform_indices = @transform_5, window_bounds = array<i64: 1, 1, 64>}]} {
    %c0 = arith.constant 0 : index
    %c0_0 = arith.constant 0 : index
    %0 = vector.load %arg1[%c0, %c0_0] : memref<32x64xf32, #tpu.memory_space<vmem>>, vector<32x64xf32>
    %c0_1 = arith.constant 0 : index
    %c0_2 = arith.constant 0 : index
    %1 = vector.load %arg2[%c0_1, %c0_2] : memref<2x64xf32, #tpu.memory_space<vmem>>, vector<1x64xf32>
    %2 = vector.broadcast %1 : vector<1x64xf32> to vector<32x64xf32>
    %3 = arith.mulf %0, %2 : vector<32x64xf32>
    %c1 = arith.constant 1 : index
    %c0_3 = arith.constant 0 : index
    %4 = vector.load %arg2[%c1, %c0_3] : memref<2x64xf32, #tpu.memory_space<vmem>>, vector<1x64xf32>
    %5 = vector.broadcast %4 : vector<1x64xf32> to vector<32x64xf32>
    %6 = arith.addf %3, %5 : vector<32x64xf32>
    %cst = arith.constant 0.000000e+00 : f32
    %7 = vector.broadcast %cst : f32 to vector<32x64xf32>
    %8 = arith.maximumf %6, %7 : vector<32x64xf32>
    %c0_4 = arith.constant 0 : index
    %c0_5 = arith.constant 0 : index
    %9 = vector.load %arg3[%c0_4, %c0_5] : memref<64x64xf32, #tpu.memory_space<vmem>>, vector<64x64xf32>
    %cst_6 = arith.constant dense<0.000000e+00> : vector<32x64xf32>
    %10 = tpu.matmul %8, %9, %cst_6 {dimension_numbers = #tpu.dot_dimension_numbers<[1], [0], [0], [1], [0, 0, 1, 1], [], []>} : vector<32x64xf32>, vector<64x64xf32>, vector<32x64xf32> -> vector<32x64xf32>
    %c0_7 = arith.constant 0 : index
    %c0_8 = arith.constant 0 : index
    %11 = vector.load %arg4[%c0_7, %c0_8] : memref<32x64xf32, #tpu.memory_space<vmem>>, vector<32x64xf32>
    tpu.vector_store %arg4[%c0_7, %c0_8], %10 {strides = array<i32>} : memref<32x64xf32, #tpu.memory_space<vmem>>, vector<32x64xf32>,
    %cst_9 = arith.constant dense<0.000000e+00> : vector<64xf32>
    %12 = vector.multi_reduction <add>, %10, %cst_9 [0] : vector<32x64xf32> to vector<64xf32>
    %13 = vector.shape_cast %12 : vector<64xf32> to vector<1x64xf32>
    %c0_10 = arith.constant 0 : index
    %c0_11 = arith.constant 0 : index
    %c0_12 = arith.constant 0 : index
    %14 = vector.load %arg5[%c0_10, %c0_11, %c0_12] : memref<1x1x64xf32, #tpu.memory_space<vmem>>, vector<1x1x64xf32>
    %15 = vector.shape_cast %14 : vector<1x1x64xf32> to vector<1x64xf32>
    %16 = vector.shape_cast %13 : vector<1x64xf32> to vector<1x1x64xf32>
    tpu.vector_store %arg5[%c0_10, %c0_11, %c0_12], %16 {strides = array<i32>} : memref<1x1x64xf32, #tpu.memory_space<vmem>>, vector<1x1x64xf32>,
    %17 = arith.mulf %10, %10 : vector<32x64xf32>
    %cst_13 = arith.constant dense<0.000000e+00> : vector<64xf32>
    %18 = vector.multi_reduction <add>, %17, %cst_13 [0] : vector<32x64xf32> to vector<64xf32>
    %19 = vector.shape_cast %18 : vector<64xf32> to vector<1x64xf32>
    %c0_14 = arith.constant 0 : index
    %c0_15 = arith.constant 0 : index
    %c0_16 = arith.constant 0 : index
    %20 = vector.load %arg6[%c0_14, %c0_15, %c0_16] : memref<1x1x64xf32, #tpu.memory_space<vmem>>, vector<1x1x64xf32>
    %21 = vector.shape_cast %20 : vector<1x1x64xf32> to vector<1x64xf32>
    %22 = vector.shape_cast %19 : vector<1x64xf32> to vector<1x1x64xf32>
    tpu.vector_store %arg6[%c0_14, %c0_15, %c0_16], %22 {strides = array<i32>} : memref<1x1x64xf32, #tpu.memory_space<vmem>>, vector<1x1x64xf32>,
    return
  }
  func.func @transform_0(%arg0: i32) -> (i32, i32) {
    %c0_i32 = arith.constant 0 : i32
    %c0_i32_0 = arith.constant 0 : i32
    return %arg0, %c0_i32 : i32, i32
  }
  func.func @transform_1(%arg0: i32) -> (i32, i32) {
    %c0_i32 = arith.constant 0 : i32
    %c0_i32_0 = arith.constant 0 : i32
    %c0_i32_1 = arith.constant 0 : i32
    return %c0_i32, %c0_i32_0 : i32, i32
  }
  func.func @transform_2(%arg0: i32) -> (i32, i32) {
    %c0_i32 = arith.constant 0 : i32
    %c0_i32_0 = arith.constant 0 : i32
    %c0_i32_1 = arith.constant 0 : i32
    return %c0_i32, %c0_i32_0 : i32, i32
  }
  func.func @transform_3(%arg0: i32) -> (i32, i32) {
    %c0_i32 = arith.constant 0 : i32
    %c0_i32_0 = arith.constant 0 : i32
    return %arg0, %c0_i32 : i32, i32
  }
  func.func @transform_4(%arg0: i32) -> (i32, i32, i32) {
    %c0_i32 = arith.constant 0 : i32
    %c0_i32_0 = arith.constant 0 : i32
    %c0_i32_1 = arith.constant 0 : i32
    return %arg0, %c0_i32, %c0_i32_0 : i32, i32, i32
  }
  func.func @transform_5(%arg0: i32) -> (i32, i32, i32) {
    %c0_i32 = arith.constant 0 : i32
    %c0_i32_0 = arith.constant 0 : i32
    %c0_i32_1 = arith.constant 0 : i32
    return %arg0, %c0_i32, %c0_i32_0 : i32, i32, i32
  }
}

module attributes {stable_mosaic.version = 11 : i64} {
  func.func @_conv12_kernel(%arg0: i32, %arg1: memref<32x3xf32, #tpu.memory_space<vmem>>, %arg2: memref<2x64xf32, #tpu.memory_space<vmem>>, %arg3: memref<3x64xf32, #tpu.memory_space<vmem>>, %arg4: memref<64x64xf32, #tpu.memory_space<vmem>>, %arg5: memref<32x64xf32, #tpu.memory_space<vmem>>, %arg6: memref<1x1x64xf32, #tpu.memory_space<vmem>>, %arg7: memref<1x1x64xf32, #tpu.memory_space<vmem>>) attributes {dimension_semantics = [#tpu.dimension_semantics<parallel>], iteration_bounds = array<i64: 1>, scalar_prefetch = 0 : i64, scratch_operands = 0 : i64, tpu.core_type = #tpu.core_type<tc>, window_params = [{transform_indices = @transform_0, window_bounds = array<i64: 32, 3>}, {pipeline_mode = #tpu.pipeline_mode<synchronous>, transform_indices = @transform_1, window_bounds = array<i64: 2, 64>}, {pipeline_mode = #tpu.pipeline_mode<synchronous>, transform_indices = @transform_2, window_bounds = array<i64: 3, 64>}, {pipeline_mode = #tpu.pipeline_mode<synchronous>, transform_indices = @transform_3, window_bounds = array<i64: 64, 64>}, {transform_indices = @transform_4, window_bounds = array<i64: 32, 64>}, {transform_indices = @transform_5, window_bounds = array<i64: 1, 1, 64>}, {transform_indices = @transform_6, window_bounds = array<i64: 1, 1, 64>}]} {
    %c0 = arith.constant 0 : index
    %c0_0 = arith.constant 0 : index
    %0 = vector.load %arg1[%c0, %c0_0] : memref<32x3xf32, #tpu.memory_space<vmem>>, vector<32x3xf32>
    %c0_1 = arith.constant 0 : index
    %c0_2 = arith.constant 0 : index
    %1 = vector.load %arg3[%c0_1, %c0_2] : memref<3x64xf32, #tpu.memory_space<vmem>>, vector<3x64xf32>
    %cst = arith.constant dense<0.000000e+00> : vector<32x64xf32>
    %2 = tpu.matmul %0, %1, %cst {dimension_numbers = #tpu.dot_dimension_numbers<[1], [0], [0], [1], [0, 0, 1, 1], [], []>} : vector<32x3xf32>, vector<3x64xf32>, vector<32x64xf32> -> vector<32x64xf32>
    %c0_3 = arith.constant 0 : index
    %c0_4 = arith.constant 0 : index
    %3 = vector.load %arg2[%c0_3, %c0_4] : memref<2x64xf32, #tpu.memory_space<vmem>>, vector<1x64xf32>
    %4 = vector.broadcast %3 : vector<1x64xf32> to vector<32x64xf32>
    %5 = arith.mulf %2, %4 : vector<32x64xf32>
    %c1 = arith.constant 1 : index
    %c0_5 = arith.constant 0 : index
    %6 = vector.load %arg2[%c1, %c0_5] : memref<2x64xf32, #tpu.memory_space<vmem>>, vector<1x64xf32>
    %7 = vector.broadcast %6 : vector<1x64xf32> to vector<32x64xf32>
    %8 = arith.addf %5, %7 : vector<32x64xf32>
    %cst_6 = arith.constant 0.000000e+00 : f32
    %9 = vector.broadcast %cst_6 : f32 to vector<32x64xf32>
    %10 = arith.maximumf %8, %9 : vector<32x64xf32>
    %c0_7 = arith.constant 0 : index
    %c0_8 = arith.constant 0 : index
    %11 = vector.load %arg4[%c0_7, %c0_8] : memref<64x64xf32, #tpu.memory_space<vmem>>, vector<64x64xf32>
    %cst_9 = arith.constant dense<0.000000e+00> : vector<32x64xf32>
    %12 = tpu.matmul %10, %11, %cst_9 {dimension_numbers = #tpu.dot_dimension_numbers<[1], [0], [0], [1], [0, 0, 1, 1], [], []>} : vector<32x64xf32>, vector<64x64xf32>, vector<32x64xf32> -> vector<32x64xf32>
    %c0_10 = arith.constant 0 : index
    %c0_11 = arith.constant 0 : index
    %13 = vector.load %arg5[%c0_10, %c0_11] : memref<32x64xf32, #tpu.memory_space<vmem>>, vector<32x64xf32>
    tpu.vector_store %arg5[%c0_10, %c0_11], %12 {strides = array<i32>} : memref<32x64xf32, #tpu.memory_space<vmem>>, vector<32x64xf32>,
    %cst_12 = arith.constant dense<0.000000e+00> : vector<64xf32>
    %14 = vector.multi_reduction <add>, %12, %cst_12 [0] : vector<32x64xf32> to vector<64xf32>
    %15 = vector.shape_cast %14 : vector<64xf32> to vector<1x64xf32>
    %c0_13 = arith.constant 0 : index
    %c0_14 = arith.constant 0 : index
    %c0_15 = arith.constant 0 : index
    %16 = vector.load %arg6[%c0_13, %c0_14, %c0_15] : memref<1x1x64xf32, #tpu.memory_space<vmem>>, vector<1x1x64xf32>
    %17 = vector.shape_cast %16 : vector<1x1x64xf32> to vector<1x64xf32>
    %18 = vector.shape_cast %15 : vector<1x64xf32> to vector<1x1x64xf32>
    tpu.vector_store %arg6[%c0_13, %c0_14, %c0_15], %18 {strides = array<i32>} : memref<1x1x64xf32, #tpu.memory_space<vmem>>, vector<1x1x64xf32>,
    %19 = arith.mulf %12, %12 : vector<32x64xf32>
    %cst_16 = arith.constant dense<0.000000e+00> : vector<64xf32>
    %20 = vector.multi_reduction <add>, %19, %cst_16 [0] : vector<32x64xf32> to vector<64xf32>
    %21 = vector.shape_cast %20 : vector<64xf32> to vector<1x64xf32>
    %c0_17 = arith.constant 0 : index
    %c0_18 = arith.constant 0 : index
    %c0_19 = arith.constant 0 : index
    %22 = vector.load %arg7[%c0_17, %c0_18, %c0_19] : memref<1x1x64xf32, #tpu.memory_space<vmem>>, vector<1x1x64xf32>
    %23 = vector.shape_cast %22 : vector<1x1x64xf32> to vector<1x64xf32>
    %24 = vector.shape_cast %21 : vector<1x64xf32> to vector<1x1x64xf32>
    tpu.vector_store %arg7[%c0_17, %c0_18, %c0_19], %24 {strides = array<i32>} : memref<1x1x64xf32, #tpu.memory_space<vmem>>, vector<1x1x64xf32>,
    return
  }
  func.func @transform_0(%arg0: i32) -> (i32, i32) {
    %c0_i32 = arith.constant 0 : i32
    %c0_i32_0 = arith.constant 0 : i32
    return %arg0, %c0_i32 : i32, i32
  }
  func.func @transform_1(%arg0: i32) -> (i32, i32) {
    %c0_i32 = arith.constant 0 : i32
    %c0_i32_0 = arith.constant 0 : i32
    %c0_i32_1 = arith.constant 0 : i32
    return %c0_i32, %c0_i32_0 : i32, i32
  }
  func.func @transform_2(%arg0: i32) -> (i32, i32) {
    %c0_i32 = arith.constant 0 : i32
    %c0_i32_0 = arith.constant 0 : i32
    %c0_i32_1 = arith.constant 0 : i32
    return %c0_i32, %c0_i32_0 : i32, i32
  }
  func.func @transform_3(%arg0: i32) -> (i32, i32) {
    %c0_i32 = arith.constant 0 : i32
    %c0_i32_0 = arith.constant 0 : i32
    %c0_i32_1 = arith.constant 0 : i32
    return %c0_i32, %c0_i32_0 : i32, i32
  }
  func.func @transform_4(%arg0: i32) -> (i32, i32) {
    %c0_i32 = arith.constant 0 : i32
    %c0_i32_0 = arith.constant 0 : i32
    return %arg0, %c0_i32 : i32, i32
  }
  func.func @transform_5(%arg0: i32) -> (i32, i32, i32) {
    %c0_i32 = arith.constant 0 : i32
    %c0_i32_0 = arith.constant 0 : i32
    %c0_i32_1 = arith.constant 0 : i32
    return %arg0, %c0_i32, %c0_i32_0 : i32, i32, i32
  }
  func.func @transform_6(%arg0: i32) -> (i32, i32, i32) {
    %c0_i32 = arith.constant 0 : i32
    %c0_i32_0 = arith.constant 0 : i32
    %c0_i32_1 = arith.constant 0 : i32
    return %arg0, %c0_i32, %c0_i32_0 : i32, i32, i32
  }
}

module attributes {stable_mosaic.version = 11 : i64} {
  func.func @_conv4_pool_kernel(%arg0: i32, %arg1: i32, %arg2: memref<1x16x64xf32, #tpu.memory_space<vmem>>, %arg3: memref<2x64xf32, #tpu.memory_space<vmem>>, %arg4: memref<64x128xf32, #tpu.memory_space<vmem>>, %arg5: memref<1x1x128xf32, #tpu.memory_space<vmem>>, %arg6: memref<1x1x128xf32, #tpu.memory_space<vmem>>, %arg7: memref<1x1x128xf32, #tpu.memory_space<vmem>>, %arg8: memref<1x1x128xf32, #tpu.memory_space<vmem>>) attributes {dimension_semantics = [#tpu.dimension_semantics<parallel>, #tpu.dimension_semantics<parallel>], iteration_bounds = array<i64: 2, 1>, scalar_prefetch = 0 : i64, scratch_operands = 0 : i64, tpu.core_type = #tpu.core_type<tc>, window_params = [{transform_indices = @transform_0, window_bounds = array<i64: 1, 16, 64>}, {pipeline_mode = #tpu.pipeline_mode<synchronous>, transform_indices = @transform_1, window_bounds = array<i64: 2, 64>}, {pipeline_mode = #tpu.pipeline_mode<synchronous>, transform_indices = @transform_2, window_bounds = array<i64: 64, 128>}, {transform_indices = @transform_3, window_bounds = array<i64: 1, 1, 128>}, {transform_indices = @transform_4, window_bounds = array<i64: 1, 1, 128>}, {transform_indices = @transform_5, window_bounds = array<i64: 1, 1, 128>}, {transform_indices = @transform_6, window_bounds = array<i64: 1, 1, 128>}]} {
    %c0 = arith.constant 0 : index
    %c0_0 = arith.constant 0 : index
    %c0_1 = arith.constant 0 : index
    %0 = vector.load %arg2[%c0, %c0_0, %c0_1] : memref<1x16x64xf32, #tpu.memory_space<vmem>>, vector<1x16x64xf32>
    %1 = vector.shape_cast %0 : vector<1x16x64xf32> to vector<16x64xf32>
    %c0_2 = arith.constant 0 : index
    %c0_3 = arith.constant 0 : index
    %2 = vector.load %arg3[%c0_2, %c0_3] : memref<2x64xf32, #tpu.memory_space<vmem>>, vector<1x64xf32>
    %3 = vector.broadcast %2 : vector<1x64xf32> to vector<16x64xf32>
    %4 = arith.mulf %1, %3 : vector<16x64xf32>
    %c1 = arith.constant 1 : index
    %c0_4 = arith.constant 0 : index
    %5 = vector.load %arg3[%c1, %c0_4] : memref<2x64xf32, #tpu.memory_space<vmem>>, vector<1x64xf32>
    %6 = vector.broadcast %5 : vector<1x64xf32> to vector<16x64xf32>
    %7 = arith.addf %4, %6 : vector<16x64xf32>
    %cst = arith.constant 0.000000e+00 : f32
    %8 = vector.broadcast %cst : f32 to vector<16x64xf32>
    %9 = arith.maximumf %7, %8 : vector<16x64xf32>
    %c0_5 = arith.constant 0 : index
    %c0_6 = arith.constant 0 : index
    %10 = vector.load %arg4[%c0_5, %c0_6] : memref<64x128xf32, #tpu.memory_space<vmem>>, vector<64x128xf32>
    %cst_7 = arith.constant dense<0.000000e+00> : vector<16x128xf32>
    %11 = tpu.matmul %9, %10, %cst_7 {dimension_numbers = #tpu.dot_dimension_numbers<[1], [0], [0], [1], [0, 0, 1, 1], [], []>} : vector<16x64xf32>, vector<64x128xf32>, vector<16x128xf32> -> vector<16x128xf32>
    %cst_8 = arith.constant dense<0.000000e+00> : vector<128xf32>
    %12 = vector.multi_reduction <add>, %11, %cst_8 [0] : vector<16x128xf32> to vector<128xf32>
    %13 = vector.shape_cast %12 : vector<128xf32> to vector<1x128xf32>
    %c0_9 = arith.constant 0 : index
    %c0_10 = arith.constant 0 : index
    %c0_11 = arith.constant 0 : index
    %14 = vector.load %arg5[%c0_9, %c0_10, %c0_11] : memref<1x1x128xf32, #tpu.memory_space<vmem>>, vector<1x1x128xf32>
    %15 = vector.shape_cast %14 : vector<1x1x128xf32> to vector<1x128xf32>
    %16 = vector.shape_cast %13 : vector<1x128xf32> to vector<1x1x128xf32>
    tpu.vector_store %arg5[%c0_9, %c0_10, %c0_11], %16 {strides = array<i32>} : memref<1x1x128xf32, #tpu.memory_space<vmem>>, vector<1x1x128xf32>,
    %17 = arith.mulf %11, %11 : vector<16x128xf32>
    %cst_12 = arith.constant dense<0.000000e+00> : vector<128xf32>
    %18 = vector.multi_reduction <add>, %17, %cst_12 [0] : vector<16x128xf32> to vector<128xf32>
    %19 = vector.shape_cast %18 : vector<128xf32> to vector<1x128xf32>
    %c0_13 = arith.constant 0 : index
    %c0_14 = arith.constant 0 : index
    %c0_15 = arith.constant 0 : index
    %20 = vector.load %arg6[%c0_13, %c0_14, %c0_15] : memref<1x1x128xf32, #tpu.memory_space<vmem>>, vector<1x1x128xf32>
    %21 = vector.shape_cast %20 : vector<1x1x128xf32> to vector<1x128xf32>
    %22 = vector.shape_cast %19 : vector<1x128xf32> to vector<1x1x128xf32>
    tpu.vector_store %arg6[%c0_13, %c0_14, %c0_15], %22 {strides = array<i32>} : memref<1x1x128xf32, #tpu.memory_space<vmem>>, vector<1x1x128xf32>,
    %cst_16 = arith.constant dense<0xFF800000> : vector<128xf32>
    %23 = vector.multi_reduction <maximumf>, %11, %cst_16 [0] : vector<16x128xf32> to vector<128xf32>
    %24 = vector.shape_cast %23 : vector<128xf32> to vector<1x128xf32>
    %c0_17 = arith.constant 0 : index
    %c0_18 = arith.constant 0 : index
    %c0_19 = arith.constant 0 : index
    %25 = vector.load %arg7[%c0_17, %c0_18, %c0_19] : memref<1x1x128xf32, #tpu.memory_space<vmem>>, vector<1x1x128xf32>
    %26 = vector.shape_cast %25 : vector<1x1x128xf32> to vector<1x128xf32>
    %27 = vector.shape_cast %24 : vector<1x128xf32> to vector<1x1x128xf32>
    tpu.vector_store %arg7[%c0_17, %c0_18, %c0_19], %27 {strides = array<i32>} : memref<1x1x128xf32, #tpu.memory_space<vmem>>, vector<1x1x128xf32>,
    %cst_20 = arith.constant dense<0x7F800000> : vector<128xf32>
    %28 = vector.multi_reduction <minimumf>, %11, %cst_20 [0] : vector<16x128xf32> to vector<128xf32>
    %29 = vector.shape_cast %28 : vector<128xf32> to vector<1x128xf32>
    %c0_21 = arith.constant 0 : index
    %c0_22 = arith.constant 0 : index
    %c0_23 = arith.constant 0 : index
    %30 = vector.load %arg8[%c0_21, %c0_22, %c0_23] : memref<1x1x128xf32, #tpu.memory_space<vmem>>, vector<1x1x128xf32>
    %31 = vector.shape_cast %30 : vector<1x1x128xf32> to vector<1x128xf32>
    %32 = vector.shape_cast %29 : vector<1x128xf32> to vector<1x1x128xf32>
    tpu.vector_store %arg8[%c0_21, %c0_22, %c0_23], %32 {strides = array<i32>} : memref<1x1x128xf32, #tpu.memory_space<vmem>>, vector<1x1x128xf32>,
    return
  }
  func.func @transform_0(%arg0: i32, %arg1: i32) -> (i32, i32, i32) {
    %c0_i32 = arith.constant 0 : i32
    %c0_i32_0 = arith.constant 0 : i32
    return %arg0, %arg1, %c0_i32 : i32, i32, i32
  }
  func.func @transform_1(%arg0: i32, %arg1: i32) -> (i32, i32) {
    %c0_i32 = arith.constant 0 : i32
    %c0_i32_0 = arith.constant 0 : i32
    %c0_i32_1 = arith.constant 0 : i32
    return %c0_i32, %c0_i32_0 : i32, i32
  }
  func.func @transform_2(%arg0: i32, %arg1: i32) -> (i32, i32) {
    %c0_i32 = arith.constant 0 : i32
    %c0_i32_0 = arith.constant 0 : i32
    %c0_i32_1 = arith.constant 0 : i32
    return %c0_i32, %c0_i32_0 : i32, i32
  }
  func.func @transform_3(%arg0: i32, %arg1: i32) -> (i32, i32, i32) {
    %c1_i32 = arith.constant 1 : i32
    %0 = arith.muli %arg0, %c1_i32 : i32
    %1 = arith.addi %0, %arg1 : i32
    %c0_i32 = arith.constant 0 : i32
    %c0_i32_0 = arith.constant 0 : i32
    %c0_i32_1 = arith.constant 0 : i32
    return %1, %c0_i32, %c0_i32_0 : i32, i32, i32
  }
  func.func @transform_4(%arg0: i32, %arg1: i32) -> (i32, i32, i32) {
    %c1_i32 = arith.constant 1 : i32
    %0 = arith.muli %arg0, %c1_i32 : i32
    %1 = arith.addi %0, %arg1 : i32
    %c0_i32 = arith.constant 0 : i32
    %c0_i32_0 = arith.constant 0 : i32
    %c0_i32_1 = arith.constant 0 : i32
    return %1, %c0_i32, %c0_i32_0 : i32, i32, i32
  }
  func.func @transform_5(%arg0: i32, %arg1: i32) -> (i32, i32, i32) {
    %c1_i32 = arith.constant 1 : i32
    %0 = arith.muli %arg0, %c1_i32 : i32
    %1 = arith.addi %0, %arg1 : i32
    %c0_i32 = arith.constant 0 : i32
    %c0_i32_0 = arith.constant 0 : i32
    %c0_i32_1 = arith.constant 0 : i32
    return %1, %c0_i32, %c0_i32_0 : i32, i32, i32
  }
  func.func @transform_6(%arg0: i32, %arg1: i32) -> (i32, i32, i32) {
    %c1_i32 = arith.constant 1 : i32
    %0 = arith.muli %arg0, %c1_i32 : i32
    %1 = arith.addi %0, %arg1 : i32
    %c0_i32 = arith.constant 0 : i32
    %c0_i32_0 = arith.constant 0 : i32
    %c0_i32_1 = arith.constant 0 : i32
    return %1, %c0_i32, %c0_i32_0 : i32, i32, i32
  }
}

module attributes {stable_mosaic.version = 11 : i64} {
  func.func @_head_kernel(%arg0: memref<2x128xf32, #tpu.memory_space<vmem>>, %arg1: memref<128x32xf32, #tpu.memory_space<vmem>>, %arg2: memref<2x32xf32, #tpu.memory_space<vmem>>, %arg3: memref<2x32xf32, #tpu.memory_space<vmem>>) attributes {dimension_semantics = [], scalar_prefetch = 0 : i64, scratch_operands = 0 : i64, tpu.core_type = #tpu.core_type<tc>} {
    %c0 = arith.constant 0 : index
    %c0_0 = arith.constant 0 : index
    %0 = vector.load %arg0[%c0, %c0_0] : memref<2x128xf32, #tpu.memory_space<vmem>>, vector<2x128xf32>
    %c0_1 = arith.constant 0 : index
    %c0_2 = arith.constant 0 : index
    %1 = vector.load %arg1[%c0_1, %c0_2] : memref<128x32xf32, #tpu.memory_space<vmem>>, vector<128x32xf32>
    %cst = arith.constant dense<0.000000e+00> : vector<2x32xf32>
    %2 = tpu.matmul %0, %1, %cst {dimension_numbers = #tpu.dot_dimension_numbers<[1], [0], [0], [1], [0, 0, 1, 1], [], []>} : vector<2x128xf32>, vector<128x32xf32>, vector<2x32xf32> -> vector<2x32xf32>
    %cst_3 = arith.constant dense<0.000000e+00> : vector<32xf32>
    %3 = vector.multi_reduction <add>, %2, %cst_3 [0] : vector<2x32xf32> to vector<32xf32>
    %4 = vector.shape_cast %3 : vector<32xf32> to vector<1x32xf32>
    %cst_4 = arith.constant 2.000000e+00 : f32
    %5 = vector.broadcast %cst_4 : f32 to vector<1x32xf32>
    %6 = arith.divf %4, %5 : vector<1x32xf32>
    %7 = arith.mulf %2, %2 : vector<2x32xf32>
    %cst_5 = arith.constant dense<0.000000e+00> : vector<32xf32>
    %8 = vector.multi_reduction <add>, %7, %cst_5 [0] : vector<2x32xf32> to vector<32xf32>
    %9 = vector.shape_cast %8 : vector<32xf32> to vector<1x32xf32>
    %cst_6 = arith.constant 2.000000e+00 : f32
    %10 = vector.broadcast %cst_6 : f32 to vector<1x32xf32>
    %11 = arith.divf %9, %10 : vector<1x32xf32>
    %12 = arith.mulf %6, %6 : vector<1x32xf32>
    %13 = arith.subf %11, %12 : vector<1x32xf32>
    %cst_7 = arith.constant 0.000000e+00 : f32
    %14 = vector.broadcast %cst_7 : f32 to vector<1x32xf32>
    %15 = arith.maximumf %13, %14 : vector<1x32xf32>
    %c0_8 = arith.constant 0 : index
    %c0_9 = arith.constant 0 : index
    %16 = vector.load %arg2[%c0_8, %c0_9] : memref<2x32xf32, #tpu.memory_space<vmem>>, vector<1x32xf32>
    %cst_10 = arith.constant 9.99999974E-6 : f32
    %17 = vector.broadcast %cst_10 : f32 to vector<1x32xf32>
    %18 = arith.addf %15, %17 : vector<1x32xf32>
    %19 = math.rsqrt %18 : vector<1x32xf32>
    %20 = arith.mulf %16, %19 : vector<1x32xf32>
    %c1 = arith.constant 1 : index
    %c0_11 = arith.constant 0 : index
    %21 = vector.load %arg2[%c1, %c0_11] : memref<2x32xf32, #tpu.memory_space<vmem>>, vector<1x32xf32>
    %22 = arith.mulf %6, %20 : vector<1x32xf32>
    %23 = arith.subf %21, %22 : vector<1x32xf32>
    %24 = vector.broadcast %20 : vector<1x32xf32> to vector<2x32xf32>
    %25 = arith.mulf %2, %24 : vector<2x32xf32>
    %26 = vector.broadcast %23 : vector<1x32xf32> to vector<2x32xf32>
    %27 = arith.addf %25, %26 : vector<2x32xf32>
    %cst_12 = arith.constant 0.000000e+00 : f32
    %28 = vector.broadcast %cst_12 : f32 to vector<2x32xf32>
    %29 = arith.maximumf %27, %28 : vector<2x32xf32>
    %c0_13 = arith.constant 0 : index
    %c0_14 = arith.constant 0 : index
    %30 = vector.load %arg3[%c0_13, %c0_14] : memref<2x32xf32, #tpu.memory_space<vmem>>, vector<2x32xf32>
    tpu.vector_store %arg3[%c0_13, %c0_14], %29 {strides = array<i32>} : memref<2x32xf32, #tpu.memory_space<vmem>>, vector<2x32xf32>,
    return
  }
}

</mosaic_0001>

<bundles_post_ra>
// kernel: part_pointnet.5
= control target key start
LH: loop header
LB: loop body
LE: loop exit
PB: predicated region body
PF: predicated region fallthrough
CT: control target
= control target key end

     0   :  { %v167_v0 = vmov 1   ;;  %v168_v1 = vmov 0   ;;  %vm16_vm0 = vcmask 23552   ;;  %v169_v14 = vmov 2   ;;  %s275_s0 = inlined_call_operand.vmem [shape: f32[32,3], index: 0, kind: input, shape index: {}]   ;;  %s276_s1 = inlined_call_operand.vmem [shape: f32[1,1,3], index: 1, kind: output, shape index: {0}]   ;;  %s277_s3 = inlined_call_operand.vmem [shape: f32[1,1,3], index: 3, kind: output, shape index: {2}]   ;;  %s278_s2 = inlined_call_operand.vmem [shape: f32[1,1,3], index: 2, kind: output, shape index: {1}]   ;;  %s279_s4 = inlined_call_operand.vmem [shape: f32[1,1,3], index: 4, kind: output, shape index: {3}]  }
   0x1   :  { %158 = vset.pattern.permute.xlu1 %v167_v0  ;;  %157 = vset.pattern.permute.xlu0 %v168_v1  ;;  %v198_v2 = vld [vmem:[%s275_s0] sm:$0xff]  ;;  %v203_v3 = vld [vmem:[%s275_s0 + $0x8] sm:$0xff]  ;;  %v208_v4 = vld [vmem:[%s275_s0 + $0x10] sm:$0xff]  ;;  %vm30_vm1 = vcmask 16384  }
   0x2   :  { %71 = vperm.xlu1 %158, %v198_v2   ;;  %v17_v5 = vsel %vm16_vm0, %v198_v2, 0.0  ;;  %34 = vperm.xlu0 %157, %v198_v2   ;;  %v18_v6 = vsel %vm16_vm0, %v203_v3, 0.0  ;;  %v20_v7 = vsel %vm16_vm0, %v208_v4, 0.0  ;;  %v221_v9 = vld [vmem:[%s275_s0 + $0x18] sm:$0xff] }
   0x3   :  { %v19_v8 = vadd.f32 %v18_v6, %v17_v5  ;;  %v22_v10 = vsel %vm16_vm0, %v221_v9, 0.0 }
   0x5   :  { %v21_v11 = vadd.f32 %v20_v7, %v19_v8 }
   0x6   :  { %75 = vperm.xlu1 %158, %v203_v3   ;;  %39 = vperm.xlu0 %157, %v203_v3  }
   0x7   :  { %v23_v12 = vadd.f32 %v22_v10, %v21_v11 }
   0x9   :  { %v24_v13 = vrot.slane %v23_v12, 4 }
   0xa   :  { %160 = vset.pattern.permute.xlu1 %v169_v14  ;;  %159 = vset.pattern.permute.xlu0 %v169_v14 }
   0xb   :  { %109 = vperm.xlu1 %160, %v203_v3   ;;  %105 = vperm.xlu0 %159, %v198_v2   ;;  %v25_v15 = vadd.f32 %v24_v13, %v23_v12 }
   0xd   :  { %v26_v16 = vrot.slane %v25_v15, 2 }
   0xf   :  { %161 = vset.pattern.permute.xlu1 %v168_v1  ;;  %162 = vset.pattern.permute.xlu0 %v167_v0  ;;  %v27_v17 = vadd.f32 %v26_v16, %v25_v15 }
  0x10   :  { %44 = vperm.xlu1 %161, %v208_v4   ;;  %79 = vperm.xlu0 %162, %v208_v4  }
  0x11   :  { %v28_v18 = vrot.slane %v27_v17, 1 }
  0x13   :  { %v29_v19 = vadd.f32 %v28_v18, %v27_v17 }
  0x14   :  { %163 = vset.pattern.permute.xlu1 %v169_v14  ;;  %83 = vperm.xlu0 %162, %v221_v9  }
  0x15   :  { %113 = vperm.xlu1 %163, %v208_v4   ;;  %31 = vst.msk [vmem:[%s276_s1] sm:$0x1] %vm30_vm1, %v29_v19 }
  0x18   :  { %166 = vset.pattern.permute.xlu0 %v169_v14 }
  0x19   :  { %164 = vset.pattern.permute.xlu1 %v168_v1 }
  0x1a   :  { %49 = vperm.xlu1 %164, %v221_v9  }
  0x1e   :  { %165 = vset.pattern.permute.xlu1 %v169_v14 }
  0x1f   :  { %117 = vperm.xlu1 %165, %v221_v9  }
  0x81   :  { %v72_v20 = vpop.permute.xlu1 %71  ;;  %v35_v21 = vpop.permute.xlu0 %34 }
  0x82   :  { %v86_v27 = vmul.f32 %v72_v20, %v198_v2  ;;  %v52_v30 = vmul.f32 %v35_v21, %v198_v2 }
  0x84   :  { %v90_v34 = vsel %vm16_vm0, %v86_v27, 0.0  ;;  %v56_v38 = vsel %vm16_vm0, %v52_v30, 0.0 }
  0x85   :  { %v76_v22 = vpop.permute.xlu1 %75  ;;  %v40_v23 = vpop.permute.xlu0 %39 }
  0x86   :  { %v87_v26 = vmul.f32 %v76_v22, %v203_v3  ;;  %v53_v32 = vmul.f32 %v40_v23, %v203_v3 }
  0x88   :  { %v91_v31 = vsel %vm16_vm0, %v87_v26, 0.0  ;;  %v57_v39 = vsel %vm16_vm0, %v53_v32, 0.0 }
  0x89   :  { %v92_v36 = vadd.f32 %v91_v31, %v90_v34  ;;  %v58_v45 = vadd.f32 %v57_v39, %v56_v38 }
  0x8a   :  { %v110_v24 = vpop.permute.xlu1 %109  ;;  %v106_v25 = vpop.permute.xlu0 %105 }
  0x8b   :  { %v121_v46 = vmul.f32 %v110_v24, %v203_v3  ;;  %v120_v47 = vmul.f32 %v106_v25, %v198_v2 }
  0x8d   :  { %v125_v54 = vsel %vm16_vm0, %v121_v46, 0.0  ;;  %v124_v55 = vsel %vm16_vm0, %v120_v47, 0.0 }
  0x8e   :  { %v126_v62 = vadd.f32 %v125_v54, %v124_v55 }
  0x8f   :  { %v45_v28 = vpop.permute.xlu1 %44  ;;  %v80_v29 = vpop.permute.xlu0 %79 }
  0x90   :  { %v88_v33 = vmul.f32 %v80_v29, %v208_v4  ;;  %v54_v40 = vmul.f32 %v45_v28, %v208_v4 }
  0x92   :  { %v93_v35 = vsel %vm16_vm0, %v88_v33, 0.0  ;;  %v59_v49 = vsel %vm16_vm0, %v54_v40, 0.0 }
  0x93   :  { %v84_v37 = vpop.permute.xlu0 %83  ;;  %v94_v43 = vadd.f32 %v93_v35, %v92_v36  ;;  %v60_v56 = vadd.f32 %v59_v49, %v58_v45 }
  0x94   :  { %v89_v41 = vmul.f32 %v84_v37, %v221_v9  ;;  %v114_v42 = vpop.permute.xlu1 %113 }
  0x95   :  { %v122_v51 = vmul.f32 %v114_v42, %v208_v4 }
  0x96   :  { %v95_v44 = vsel %vm16_vm0, %v89_v41, 0.0 }
  0x97   :  { %v96_v48 = vadd.f32 %v95_v44, %v94_v43  ;;  %v127_v60 = vsel %vm16_vm0, %v122_v51, 0.0 }
  0x98   :  { %v128_v3 = vadd.f32 %v127_v60, %v126_v62 }
  0x99   :  { %v97_v50 = vrot.slane %v96_v48, 4  ;;  %v50_v52 = vpop.permute.xlu1 %49 }
  0x9a   :  { %v55_v53 = vmul.f32 %v50_v52, %v221_v9 }
  0x9b   :  { %v98_v57 = vadd.f32 %v97_v50, %v96_v48 }
  0x9c   :  { %v61_v58 = vsel %vm16_vm0, %v55_v53, 0.0 }
  0x9d   :  { %v99_v59 = vrot.slane %v98_v57, 2  ;;  %v62_v61 = vadd.f32 %v61_v58, %v60_v56 }
  0x9e   :  { %v118_v63 = vpop.permute.xlu1 %117 }
  0x9f   :  { %v100_v0 = vadd.f32 %v99_v59, %v98_v57  ;;  %v63_v1 = vrot.slane %v62_v61, 4  ;;  %v123_v2 = vmul.f32 %v118_v63, %v221_v9 }
  0xa1   :  { %v101_v4 = vrot.slane %v100_v0, 1  ;;  %v64_v5 = vadd.f32 %v63_v1, %v62_v61  ;;  %v129_v6 = vsel %vm16_vm0, %v123_v2, 0.0 }
  0xa2   :  { %v130_v7 = vadd.f32 %v129_v6, %v128_v3 }
  0xa3   :  { %v102_v8 = vadd.f32 %v101_v4, %v100_v0  ;;  %v65_v10 = vrot.slane %v64_v5, 2 }
  0xa4   :  { %v131_v11 = vrot.slane %v130_v7, 4 }
  0xa5   :  { %103 = vst.msk [vmem:[%s277_s3] sm:$0x1] %vm30_vm1, %v102_v8  ;;  %v66_v12 = vadd.f32 %v65_v10, %v64_v5 }
  0xa6   :  { %v132_v13 = vadd.f32 %v131_v11, %v130_v7 }
  0xa7   :  { %v67_v14 = vrot.slane %v66_v12, 1 }
  0xa8   :  { %v133_v15 = vrot.slane %v132_v13, 2 }
  0xa9   :  { %v68_v16 = vadd.f32 %v67_v14, %v66_v12 }
  0xaa   :  { %v134_v9 = vadd.f32 %v133_v15, %v132_v13 }
  0xab   :  { %69 = vst.msk [vmem:[%s278_s2] sm:$0x1] %vm30_vm1, %v68_v16 }
  0xac   :  { %v135_v17 = vrot.slane %v134_v9, 1 }
  0xae   :  { %v136_v18 = vadd.f32 %v135_v17, %v134_v9 }
  0xb0   :  { %137 = vst.msk [vmem:[%s279_s4] sm:$0x1] %vm30_vm1, %v136_v18 }

// kernel: part_pointnet.7
= control target key start
LH: loop header
LB: loop body
LE: loop exit
PB: predicated region body
PF: predicated region fallthrough
CT: control target
= control target key end

     0   :  { %vm51_vm0 = vcmask 523264   ;;  %vm166_vm1 = vcmask 516096   ;;  %s368_s2 = inlined_call_operand.vmem [shape: f32[64,64], index: 2, kind: input, shape index: {}]   ;;  %s369_s0 = inlined_call_operand.vmem [shape: f32[32,64], index: 0, kind: input, shape index: {}]   ;;  %s370_s1 = inlined_call_operand.vmem [shape: f32[2,64], index: 1, kind: input, shape index: {}]   ;;  %s371_s3 = inlined_call_operand.vmem [shape: f32[32,64], index: 3, kind: output, shape index: {0}]   ;;  %s372_s4 = inlined_call_operand.vmem [shape: f32[1,1,64], index: 4, kind: output, shape index: {1}]   ;;  %s373_s5 = inlined_call_operand.vmem [shape: f32[1,1,64], index: 5, kind: output, shape index: {2}]  }
   0x1   :  { %v43_v0 = vld [vmem:[%s368_s2] sm:$0xff]  ;;  %v44_v1 = vld [vmem:[%s368_s2 + $0x8] sm:$0xff]  ;;  %v45_v2 = vld [vmem:[%s368_s2 + $0x10] sm:$0xff] }
   0x2   :  { %v238_v3 = vpack.c.bf16 %v44_v1, %v43_v0  ;;  %v46_v4 = vld [vmem:[%s368_s2 + $0x18] sm:$0xff]  ;;  %v47_v6 = vld [vmem:[%s368_s2 + $0x20] sm:$0xff]  ;;  %v48_v7 = vld [vmem:[%s368_s2 + $0x28] sm:$0xff] }
   0x3   :  { %v242_v5 = vpack.c.bf16 %v46_v4, %v45_v2  ;;  %v17_v8 = vld [vmem:[%s369_s0] sm:$0xff]  ;;  %v18_v12 = vld [vmem:[%s369_s0 + $0x8] sm:$0xff]  ;;  %v19_v13 = vld [vmem:[%s369_s0 + $0x10] sm:$0xff]  ;;  %v246_v15 = vpack.c.bf16 %v48_v7, %v47_v6 }
   0x4   :  { %239 = vmatprep.subr.bf16.mxu0 %v238_v3  ;;  %254 = vmatprep.subr.bf16.mxu1 %v238_v3  ;;  %v198_v9 = vld [vmem:[%s370_s1] ss:$0 sm:$0xff]  ;;  %v199_v10 = vld [vmem:[%s370_s1 + $0x1] ss:$0 sm:$0xff]  ;;  %v20_v14 = vld [vmem:[%s369_s0 + $0x18] sm:$0xff] }
   0x5   :  { %241 = vmatpush3.bf16.msra.mxu0 %v238_v3  ;;  %258 = vmatpush3.bf16.msra.mxu1 %v238_v3  ;;  %v26_v11 = vmul.f32 %v198_v9, %v17_v8  ;;  %v28_v16 = vmul.f32 %v198_v9, %v19_v13  ;;  %v49_v17 = vld [vmem:[%s368_s2 + $0x30] sm:$0xff]  ;;  %v50_v18 = vld [vmem:[%s368_s2 + $0x38] sm:$0xff]  ;;  %v27_v20 = vmul.f32 %v198_v9, %v18_v12 }
   0x6   :  { %243 = vmatprep.subr.bf16.mxu0 %v242_v5  ;;  %255 = vmatprep.subr.bf16.mxu1 %v242_v5  ;;  %v29_v22 = vmul.f32 %v198_v9, %v20_v14  ;;  %v250_v24 = vpack.c.bf16 %v50_v18, %v49_v17 }
   0x7   :  { %v35_v19 = vadd.f32 %v199_v10, %v26_v11  ;;  %v37_v21 = vadd.f32 %v199_v10, %v28_v16  ;;  %v36_v26 = vadd.f32 %v199_v10, %v27_v20 }
   0x8   :  { %v38_v27 = vadd.f32 %v199_v10, %v29_v22 }
   0x9   :  { %245 = vmatpush3.bf16.msra.mxu0 %v242_v5  ;;  %259 = vmatpush3.bf16.msra.mxu1 %v242_v5  ;;  %v39_v23 = vmax.f32 %v35_v19, 0.0  ;;  %v41_v25 = vmax.f32 %v37_v21, 0.0  ;;  %v40_v28 = vmax.f32 %v36_v26, 0.0 }
   0xa   :  { %247 = vmatprep.subr.bf16.mxu0 %v246_v15  ;;  %256 = vmatprep.subr.bf16.mxu1 %v246_v15  ;;  %v42_v29 = vmax.f32 %v38_v27, 0.0 }
   0xb   :  { %232 = vmatprep.mubr.msk.f32.mxu0 %vm51_vm0, %v39_v23  ;;  %235 = vmatprep.mubr.msk.f32.mxu1 %vm51_vm0, %v41_v25 }
   0xd   :  { %249 = vmatpush3.bf16.msra.mxu0 %v246_v15  ;;  %260 = vmatpush3.bf16.msra.mxu1 %v246_v15 }
   0xe   :  { %251 = vmatprep.subr.bf16.mxu0 %v250_v24  ;;  %257 = vmatprep.subr.bf16.mxu1 %v250_v24 }
  0x11   :  { %253 = vmatpush3.bf16.msra.mxu0 %v250_v24  ;;  %261 = vmatpush3.bf16.msra.mxu1 %v250_v24 }
  0x14   :  { %233 = vmatmul.mubr.msk.f32.vlgmr.msra.gmra.mrb[0].mxu0 %vm51_vm0, %v40_v28  ;;  %236 = vmatmul.mubr.msk.f32.vlgmr.msra.gmra.mrb[0].mxu1 %vm51_vm0, %v42_v29 }
  0xe7   :  { %v234_v30 = vpop.f32.mrb[0].mxu0  ;;  %v237_v31 = vpop.f32.mrb[0].mxu1 }
  0xe8   :  { %150 = vst.msk [vmem:[%s371_s3 + $0x8] sm:$0xff] %vm51_vm0, %v234_v30  ;;  %v154_v32 = vsel %vm51_vm0, %v234_v30, 0.0  ;;  %v169_v33 = vmul.f32 %v234_v30, %v234_v30  ;;  %v130_v34 = vpop.f32.mrb[1].mxu0  ;;  %152 = vst.msk [vmem:[%s371_s3 + $0x18] sm:$0xff] %vm51_vm0, %v237_v31  ;;  %v140_v35 = vpop.f32.mrb[1].mxu1  ;;  %v171_v43 = vmul.f32 %v237_v31, %v237_v31  ;;  %v158_v47 = vsel %vm51_vm0, %v237_v31, 0.0 }
  0xe9   :  { %149 = vst.msk [vmem:[%s371_s3] sm:$0xff] %vm51_vm0, %v130_v34  ;;  %v153_v36 = vsel %vm51_vm0, %v130_v34, 0.0  ;;  %v168_v37 = vmul.f32 %v130_v34, %v130_v34  ;;  %151 = vst.msk [vmem:[%s371_s3 + $0x10] sm:$0xff] %vm51_vm0, %v140_v35  ;;  %v156_v38 = vsel %vm51_vm0, %v140_v35, 0.0  ;;  %v170_v39 = vmul.f32 %v140_v35, %v140_v35 }
  0xea   :  { %v173_v40 = vsel %vm51_vm0, %v169_v33, 0.0  ;;  %v155_v41 = vadd.f32 %v154_v32, %v153_v36  ;;  %v177_v50 = vsel %vm51_vm0, %v171_v43, 0.0 }
  0xeb   :  { %v172_v42 = vsel %vm51_vm0, %v168_v37, 0.0  ;;  %v175_v44 = vsel %vm51_vm0, %v170_v39, 0.0 }
  0xec   :  { %v174_v45 = vadd.f32 %v173_v40, %v172_v42  ;;  %v157_v46 = vadd.f32 %v156_v38, %v155_v41 }
  0xee   :  { %v159_v48 = vadd.f32 %v158_v47, %v157_v46  ;;  %v176_v49 = vadd.f32 %v175_v44, %v174_v45 }
  0xf0   :  { %v160_v51 = vrot.slane %v159_v48, 4  ;;  %v178_v52 = vadd.f32 %v177_v50, %v176_v49 }
  0xf2   :  { %v161_v53 = vadd.f32 %v160_v51, %v159_v48  ;;  %v179_v54 = vrot.slane %v178_v52, 4 }
  0xf4   :  { %v162_v55 = vrot.slane %v161_v53, 2  ;;  %v180_v56 = vadd.f32 %v179_v54, %v178_v52 }
  0xf6   :  { %v163_v57 = vadd.f32 %v162_v55, %v161_v53  ;;  %v181_v58 = vrot.slane %v180_v56, 2 }
  0xf8   :  { %v164_v59 = vrot.slane %v163_v57, 1  ;;  %v182_v60 = vadd.f32 %v181_v58, %v180_v56 }
  0xfa   :  { %v165_v61 = vadd.f32 %v164_v59, %v163_v57  ;;  %v183_v62 = vrot.slane %v182_v60, 1 }
  0xfc   :  { %167 = vst.msk [vmem:[%s372_s4] sm:$0x1] %vm166_vm1, %v165_v61  ;;  %v184_v63 = vadd.f32 %v183_v62, %v182_v60 }
  0xfe   :  { %185 = vst.msk [vmem:[%s373_s5] sm:$0x1] %vm166_vm1, %v184_v63 }

// kernel: part_pointnet.6
= control target key start
LH: loop header
LB: loop body
LE: loop exit
PB: predicated region body
PF: predicated region fallthrough
CT: control target
= control target key end

     0   :  { %vm38_vm0 = vcmask 1042432   ;;  %vm25_vm1 = vcmask 23552   ;;  %vm157_vm2 = vcmask 523264   ;;  %vm272_vm3 = vcmask 516096   ;;  %s504_s2 = inlined_call_operand.vmem [shape: f32[3,64], index: 2, kind: input, shape index: {}]   ;;  %s505_s0 = inlined_call_operand.vmem [shape: f32[32,3], index: 0, kind: input, shape index: {}]   ;;  %s506_s3 = inlined_call_operand.vmem [shape: f32[64,64], index: 3, kind: input, shape index: {}]   ;;  %s507_s1 = inlined_call_operand.vmem [shape: f32[2,64], index: 1, kind: input, shape index: {}]   ;;  %s508_s4 = inlined_call_operand.vmem [shape: f32[32,64], index: 4, kind: output, shape index: {0}]   ;;  %s509_s5 = inlined_call_operand.vmem [shape: f32[1,1,64], index: 5, kind: output, shape index: {1}]   ;;  %s510_s6 = inlined_call_operand.vmem [shape: f32[1,1,64], index: 6, kind: output, shape index: {2}]  }
   0x1   :  { %v24_v0 = vld [vmem:[%s504_s2] sm:$0x7]  ;;  %v21_v2 = vld [vmem:[%s505_s0 + $0x8] sm:$0xff]  ;;  %v22_v3 = vld [vmem:[%s505_s0 + $0x10] sm:$0xff] }
   0x2   :  { %v20_v1 = vld [vmem:[%s505_s0] sm:$0xff]  ;;  %332 = vmatprep.subr.msk.mxu0 %vm38_vm0, %v24_v0  ;;  %v150_v5 = vld [vmem:[%s506_s3 + $0x8] sm:$0xff]  ;;  %v151_v6 = vld [vmem:[%s506_s3 + $0x10] sm:$0xff] }
   0x3   :  { %334 = vmatprep.mubr.msk.f32.mxu0 %vm25_vm1, %v20_v1  ;;  %v149_v4 = vld [vmem:[%s506_s3] sm:$0xff]  ;;  %333 = vmatpush3.msk.msra.mxu0 %vm38_vm0, %v24_v0  ;;  %v152_v7 = vld [vmem:[%s506_s3 + $0x18] sm:$0xff]  ;;  %v154_v12 = vld [vmem:[%s506_s3 + $0x28] sm:$0xff] }
   0x4   :  { %335 = vmatmul.mubr.msk.f32.vlgmr.msra.gmra.mrb[0].mxu0 %vm25_vm1, %v21_v2  ;;  %v362_v8 = vpack.c.bf16 %v150_v5, %v149_v4  ;;  %v366_v9 = vpack.c.bf16 %v152_v7, %v151_v6  ;;  %v23_v10 = vld [vmem:[%s505_s0 + $0x18] sm:$0xff]  ;;  %v153_v11 = vld [vmem:[%s506_s3 + $0x20] sm:$0xff]  ;;  %v155_v14 = vld [vmem:[%s506_s3 + $0x30] sm:$0xff] }
   0x5   :  { %337 = vmatprep.mubr.msk.f32.mxu0 %vm25_vm1, %v22_v3  ;;  %v370_v13 = vpack.c.bf16 %v154_v12, %v153_v11  ;;  %v156_v15 = vld [vmem:[%s506_s3 + $0x38] sm:$0xff]  ;;  %v309_v17 = vld [vmem:[%s507_s1] ss:$0 sm:$0xff]  ;;  %v310_v19 = vld [vmem:[%s507_s1 + $0x1] ss:$0 sm:$0xff] }
   0x6   :  { %363 = vmatprep.subr.bf16.mxu0 %v362_v8  ;;  %378 = vmatprep.subr.bf16.mxu1 %v362_v8  ;;  %v374_v16 = vpack.c.bf16 %v156_v15, %v155_v14 }
   0x7   :  { %365 = vmatpush3.bf16.msra.mxu0 %v362_v8  ;;  %382 = vmatpush3.bf16.msra.mxu1 %v362_v8 }
   0x8   :  { %338 = vmatmul.mubr.msk.f32.gmra.mrb[2].mxu0 %vm25_vm1, %v23_v10  ;;  %367 = vmatprep.subr.bf16.mxu0 %v366_v9 }
   0x9   :  { %379 = vmatprep.subr.bf16.mxu1 %v366_v9 }
   0xb   :  { %369 = vmatpush3.bf16.msra.mxu0 %v366_v9  ;;  %383 = vmatpush3.bf16.msra.mxu1 %v366_v9 }
   0xc   :  { %371 = vmatprep.subr.bf16.mxu0 %v370_v13  ;;  %380 = vmatprep.subr.bf16.mxu1 %v370_v13 }
   0xf   :  { %373 = vmatpush3.bf16.msra.mxu0 %v370_v13  ;;  %384 = vmatpush3.bf16.msra.mxu1 %v370_v13 }
  0x10   :  { %375 = vmatprep.subr.bf16.mxu0 %v374_v16  ;;  %381 = vmatprep.subr.bf16.mxu1 %v374_v16 }
  0x13   :  { %377 = vmatpush3.bf16.msra.mxu0 %v374_v16  ;;  %385 = vmatpush3.bf16.msra.mxu1 %v374_v16 }
  0xd7   :  { %v336_v18 = vpop.f32.mrb[0].mxu0 }
  0xd8   :  { %v133_v20 = vmul.f32 %v336_v18, %v309_v17  ;;  %v108_v21 = vpop.f32.mrb[1].mxu0 }
  0xd9   :  { %v132_v22 = vmul.f32 %v309_v17, %v108_v21 }
  0xda   :  { %v142_v23 = vadd.f32 %v310_v19, %v133_v20 }
  0xdb   :  { %v141_v24 = vadd.f32 %v310_v19, %v132_v22  ;;  %v339_v25 = vpop.f32.mrb[2].mxu0 }
  0xdc   :  { %v135_v26 = vmul.f32 %v339_v25, %v309_v17  ;;  %v118_v27 = vpop.f32.mrb[3].mxu0  ;;  %v146_v30 = vmax.f32 %v142_v23, 0.0 }
  0xdd   :  { %v145_v28 = vmax.f32 %v141_v24, 0.0  ;;  %v134_v29 = vmul.f32 %v309_v17, %v118_v27 }
  0xde   :  { %v144_v31 = vadd.f32 %v310_v19, %v135_v26 }
  0xdf   :  { %356 = vmatprep.mubr.msk.f32.mxu0 %vm157_vm2, %v145_v28  ;;  %v143_v32 = vadd.f32 %v310_v19, %v134_v29 }
  0xe0   :  { %357 = vmatmul.mubr.msk.f32.vlgmr.msra.gmra.mrb[4].mxu0 %vm157_vm2, %v146_v30  ;;  %v148_v34 = vmax.f32 %v144_v31, 0.0 }
  0xe1   :  { %v147_v33 = vmax.f32 %v143_v32, 0.0 }
  0xe3   :  { %359 = vmatprep.mubr.msk.f32.mxu1 %vm157_vm2, %v147_v33 }
  0xe4   :  { %360 = vmatmul.mubr.msk.f32.vlgmr.msra.gmra.mrb[0].mxu1 %vm157_vm2, %v148_v34 }
 0x1b3   :  { %v358_v35 = vpop.f32.mrb[4].mxu0 }
 0x1b4   :  { %256 = vst.msk [vmem:[%s508_s4 + $0x8] sm:$0xff] %vm157_vm2, %v358_v35  ;;  %v260_v36 = vsel %vm157_vm2, %v358_v35, 0.0  ;;  %v275_v37 = vmul.f32 %v358_v35, %v358_v35  ;;  %v236_v38 = vpop.f32.mrb[5].mxu0 }
 0x1b5   :  { %255 = vst.msk [vmem:[%s508_s4] sm:$0xff] %vm157_vm2, %v236_v38  ;;  %v259_v39 = vsel %vm157_vm2, %v236_v38, 0.0  ;;  %v274_v40 = vmul.f32 %v236_v38, %v236_v38 }
 0x1b6   :  { %v279_v41 = vsel %vm157_vm2, %v275_v37, 0.0  ;;  %v261_v42 = vadd.f32 %v260_v36, %v259_v39 }
 0x1b7   :  { %v278_v43 = vsel %vm157_vm2, %v274_v40, 0.0  ;;  %v361_v44 = vpop.f32.mrb[0].mxu1 }
 0x1b8   :  { %v280_v45 = vadd.f32 %v279_v41, %v278_v43  ;;  %258 = vst.msk [vmem:[%s508_s4 + $0x18] sm:$0xff] %vm157_vm2, %v361_v44  ;;  %v246_v46 = vpop.f32.mrb[1].mxu1  ;;  %v277_v47 = vmul.f32 %v361_v44, %v361_v44  ;;  %v264_v51 = vsel %vm157_vm2, %v361_v44, 0.0 }
 0x1b9   :  { %257 = vst.msk [vmem:[%s508_s4 + $0x10] sm:$0xff] %vm157_vm2, %v246_v46  ;;  %v262_v48 = vsel %vm157_vm2, %v246_v46, 0.0  ;;  %v276_v49 = vmul.f32 %v246_v46, %v246_v46 }
 0x1ba   :  { %v263_v50 = vadd.f32 %v262_v48, %v261_v42  ;;  %v283_v55 = vsel %vm157_vm2, %v277_v47, 0.0 }
 0x1bb   :  { %v281_v52 = vsel %vm157_vm2, %v276_v49, 0.0 }
 0x1bc   :  { %v265_v53 = vadd.f32 %v264_v51, %v263_v50  ;;  %v282_v54 = vadd.f32 %v281_v52, %v280_v45 }
 0x1be   :  { %v266_v56 = vrot.slane %v265_v53, 4  ;;  %v284_v57 = vadd.f32 %v283_v55, %v282_v54 }
 0x1c0   :  { %v267_v58 = vadd.f32 %v266_v56, %v265_v53  ;;  %v285_v59 = vrot.slane %v284_v57, 4 }
 0x1c2   :  { %v268_v60 = vrot.slane %v267_v58, 2  ;;  %v286_v61 = vadd.f32 %v285_v59, %v284_v57 }
 0x1c4   :  { %v269_v62 = vadd.f32 %v268_v60, %v267_v58  ;;  %v287_v63 = vrot.slane %v286_v61, 2 }
 0x1c6   :  { %v270_v0 = vrot.slane %v269_v62, 1  ;;  %v288_v1 = vadd.f32 %v287_v63, %v286_v61 }
 0x1c8   :  { %v271_v2 = vadd.f32 %v270_v0, %v269_v62  ;;  %v289_v3 = vrot.slane %v288_v1, 1 }
 0x1ca   :  { %273 = vst.msk [vmem:[%s509_s5] sm:$0x1] %vm272_vm3, %v271_v2  ;;  %v290_v4 = vadd.f32 %v289_v3, %v288_v1 }
 0x1cc   :  { %291 = vst.msk [vmem:[%s510_s6] sm:$0x1] %vm272_vm3, %v290_v4 }

// kernel: part_pointnet.8
= control target key start
LH: loop header
LB: loop body
LE: loop exit
PB: predicated region body
PF: predicated region fallthrough
CT: control target
= control target key end

     0   :  { %s754_s21 = smov 0   ;;  %s756_s22 = smov 0   ;;  %s833_s0 = inlined_call_operand.vmem [shape: f32[2,16,64], index: 0, kind: input, shape index: {}]   ;;  %s834_s1 = inlined_call_operand.vmem [shape: f32[2,64], index: 1, kind: input, shape index: {}]   ;;  %s835_s2 = inlined_call_operand.vmem [shape: f32[64,128], index: 2, kind: input, shape index: {}]   ;;  %s836_s3 = inlined_call_operand.vmem [shape: f32[2,1,128], index: 3, kind: output, shape index: {0}]   ;;  %s837_s4 = inlined_call_operand.vmem [shape: f32[2,1,128], index: 4, kind: output, shape index: {1}]   ;;  %s838_s5 = inlined_call_operand.vmem [shape: f32[2,1,128], index: 5, kind: output, shape index: {2}]   ;;  %s839_s6 = inlined_call_operand.vmem [shape: f32[2,1,128], index: 6, kind: output, shape index: {3}]  }
   0x1   :  { %s758_s23 = smov 0  }
   0x2 LB: > { %s29_s24 = sadd.s32 1, %s713_s22  ;;  %p616_p0 = scmp.ge.s32.totalorder %s717_s23, 1  ;;  %s717_s23 = sphi %s758_s23, %s17_s23   ;;  %s713_s22 = sphi %s756_s22, %s841_s22   ;;  %s709_s21 = sphi %s754_s21, %s840_s21  }
   0x3   : > { %p31_p1 = scmp.ge.s32.totalorder %s29_s24, 2  ;;  %p246_p2 = scmp.lt.s32.totalorder %s717_s23, 3 }
   0x5   : > { %s843_s24 = smov (%p31_p1, %s29_s24), 0  ;;  %p247_p3 = pnand %p616_p0, %p246_p2 }
   0x6   : > { %v339_v0 = vld [vmem:[%s835_s2] sm:$0xff] (!%p247_p3)  ;;  %v340_v1 = vld [vmem:[%s835_s2 + $0x8] sm:$0xff] (!%p247_p3)  ;;  %v341_v2 = vld [vmem:[%s835_s2 + $0x10] sm:$0xff] (!%p247_p3)  ;;  %p292_p4 = scmp.lt.s32.totalorder (!%p247_p3), %s709_s21, 1  ;;  %vm347_vm0 = vcmask (!%p247_p3), 523264  }
   0x7   : > { %250 = sbr.rel (%p247_p3) target bundleno = 255 (0xff), region = 32  ;;  %v655_v3 = vpack.c.bf16 (!%p247_p3), %v340_v1, %v339_v0  ;;  %v342_v4 = vld [vmem:[%s835_s2 + $0x18] sm:$0xff] (!%p247_p3)  ;;  %v343_v6 = vld [vmem:[%s835_s2 + $0x20] sm:$0xff] (!%p247_p3)  ;;  %v344_v7 = vld [vmem:[%s835_s2 + $0x28] sm:$0xff] (!%p247_p3) }
   0x8   : > { %v659_v5 = vpack.c.bf16 (!%p247_p3), %v342_v4, %v341_v2  ;;  %v619_v8 = vld [vmem:[%s834_s1] ss:$0 sm:$0xff] (!%p247_p3)  ;;  %v663_v9 = vpack.c.bf16 (!%p247_p3), %v344_v7, %v343_v6  ;;  %v345_v10 = vld [vmem:[%s835_s2 + $0x30] sm:$0xff] (!%p247_p3)  ;;  %v346_v11 = vld [vmem:[%s835_s2 + $0x38] sm:$0xff] (!%p247_p3) }
   0x9   : > { %656 = vmatprep.subr.bf16.mxu0 (!%p247_p3), %v655_v3  ;;  %v620_v14 = vld [vmem:[%s834_s1 + $0x1] ss:$0 sm:$0xff] (!%p247_p3)  ;;  %v667_v17 = vpack.c.bf16 (!%p247_p3), %v346_v11, %v345_v10 }
   0xa   : > { %658 = vmatpush3.bf16.msra.mxu0 (!%p247_p3), %v655_v3 }
   0xb   : > { %660 = vmatprep.subr.bf16.mxu0 (!%p247_p3), %v659_v5 }
   0xe   : > { %s845_s21 = smov (!%p292_p4, %s709_s21), 1  ;;  %662 = vmatpush3.bf16.msra.mxu0 %v659_v5 }
   0xf   : > { %s625_s13 = sshll.u32 %s845_s21, 4  ;;  %664 = vmatprep.subr.bf16.mxu0 %v663_v9  ;;  %s304_s7 = scalar_lea.vmem %s836_s3, %s845_s21 }
  0x10   : > { %s299_s26 = scalar_lea.vmem %s833_s0, %s625_s13  ;;  %s314_s10 = scalar_lea.vmem %s838_s5, %s845_s21 }
  0x11   : > { %v321_v12 = vld [vmem:[%s299_s26] sm:$0xff]  ;;  %v322_v13 = vld [vmem:[%s299_s26 + $0x8] sm:$0xff]  ;;  %s319_s13 = scalar_lea.vmem %s839_s6, %s845_s21  ;;  %s309_s16 = scalar_lea.vmem %s837_s4, %s845_s21 }
  0x12   : > { %v328_v15 = vmul.f32 %v619_v8, %v321_v12  ;;  %v329_v16 = vmul.f32 %v619_v8, %v322_v13  ;;  %666 = vmatpush3.bf16.msra.mxu0 %v663_v9 }
  0x13   : > { %668 = vmatprep.subr.bf16.mxu0 %v667_v17 }
  0x14   : > { %v335_v18 = vadd.f32 %v620_v14, %v328_v15  ;;  %v336_v19 = vadd.f32 %v620_v14, %v329_v16 }
  0x16   : > { %v337_v20 = vmax.f32 %v335_v18, 0.0  ;;  %v338_v21 = vmax.f32 %v336_v19, 0.0  ;;  %670 = vmatpush3.bf16.msra.mxu0 %v667_v17 }
  0x18   : > { %652 = vmatprep.mubr.msk.f32.mxu0 %vm347_vm0, %v337_v20 }
  0x19   : > { %653 = vmatmul.mubr.msk.f32.vlgmr.msra.gmra.mrb[0].mxu0 %vm347_vm0, %v338_v21 }
  0xec   : > { %v654_v22 = vpop.f32.mrb[0].mxu0 }
  0xed   : > { %v438_v23 = vmul.f32 %v654_v22, %v654_v22  ;;  %v420_v24 = vpop.f32.mrb[1].mxu0 }
  0xee   : > { %v429_v25 = vadd.f32 %v654_v22, %v420_v24  ;;  %v437_v26 = vmul.f32 %v420_v24, %v420_v24  ;;  %v447_v27 = vmax.f32 %v420_v24, %v654_v22  ;;  %v455_v28 = vmin.f32 %v420_v24, %v654_v22 }
  0xf0   : > { %v430_v29 = vrot.slane %v429_v25, 4  ;;  %v439_v30 = vadd.f32 %v438_v23, %v437_v26  ;;  %v448_v31 = vrot.slane %v447_v27, 4  ;;  %v456_v32 = vrot.slane %v455_v28, 4 }
  0xf2   : > { %v431_v33 = vadd.f32 %v430_v29, %v429_v25  ;;  %v440_v34 = vrot.slane %v439_v30, 4  ;;  %v449_v35 = vmax.f32 %v447_v27, %v448_v31  ;;  %v457_v36 = vmin.f32 %v455_v28, %v456_v32 }
  0xf4   : > { %v432_v37 = vrot.slane %v431_v33, 2  ;;  %v441_v38 = vadd.f32 %v440_v34, %v439_v30  ;;  %v450_v39 = vrot.slane %v449_v35, 2  ;;  %v458_v40 = vrot.slane %v457_v36, 2 }
  0xf6   : > { %v433_v41 = vadd.f32 %v432_v37, %v431_v33  ;;  %v442_v42 = vrot.slane %v441_v38, 2  ;;  %v451_v43 = vmax.f32 %v449_v35, %v450_v39  ;;  %v459_v44 = vmin.f32 %v457_v36, %v458_v40 }
  0xf8   : > { %v434_v45 = vrot.slane %v433_v41, 1  ;;  %v443_v46 = vadd.f32 %v442_v42, %v441_v38  ;;  %v452_v47 = vrot.slane %v451_v43, 1  ;;  %v460_v48 = vrot.slane %v459_v44, 1 }
  0xfa   : > { %v435_v49 = vadd.f32 %v434_v45, %v433_v41  ;;  %v444_v50 = vrot.slane %v443_v46, 1  ;;  %v453_v51 = vmax.f32 %v451_v43, %v452_v47  ;;  %v461_v52 = vmin.f32 %v459_v44, %v460_v48 }
  0xfc   : > { %436 = vst [vmem:[%s304_s7] sm:$0x1] %v435_v49  ;;  %v445_v53 = vadd.f32 %v444_v50, %v443_v46  ;;  %454 = vst [vmem:[%s314_s10] sm:$0x1] %v453_v51 }
  0xfd   : > { %462 = vst [vmem:[%s319_s13] sm:$0x1] %v461_v52 }
  0xfe   : > { %446 = vst [vmem:[%s309_s16] sm:$0x1] %v445_v53 }
  0xff PF: > { %s17_s23 = sadd.s32 1, %s717_s23   ;;  %s840_s21 = smov %s713_s22 }
 0x100   : > { %p14_p5 = scmp.ge.s32.totalorder %s17_s23, 4   ;;  %s841_s22 = smov %s843_s24 }
 0x102   :  { %16 = sbr.rel (!%p14_p5) target bundleno = 2 (0x2), region = 98 }

// kernel: part_pointnet.9
= control target key start
LH: loop header
LB: loop body
LE: loop exit
PB: predicated region body
PF: predicated region fallthrough
CT: control target
= control target key end

     0   :  { %v263_v3 = vmov 0.0|0.0   ;;  %vm264_vm0 = vmmov 0   ;;  %v265_v6 = vmov 0.0   ;;  %s359_s0 = inlined_call_operand.vmem [shape: f32[2,128], index: 0, kind: input, shape index: {}]   ;;  %s360_s1 = inlined_call_operand.vmem [shape: f32[128,32], index: 1, kind: input, shape index: {}]   ;;  %s361_s2 = inlined_call_operand.vmem [shape: f32[2,32], index: 2, kind: input, shape index: {}]   ;;  %s362_s3 = inlined_call_operand.hbm [shape: f32[2,32], index: 3, kind: output, shape index: {}]  }
   0x1   :  { %v16_v0 = vld [vmem:[%s360_s1] sm:$0xff]  ;;  %v17_v1 = vld [vmem:[%s360_s1 + $0x8] sm:$0xff]  ;;  %v18_v2 = vld [vmem:[%s360_s1 + $0x10] sm:$0xff]  ;;  %209 = vmatprep.subr.bf16.mxu0 %v263_v3  ;;  %206 = vmatprep.mubr.msk.f32.mxu0 %vm264_vm0, %v265_v6 }
   0x2   :  { %v210_v4 = vpack.c.bf16 %v17_v1, %v16_v0  ;;  %v19_v5 = vld [vmem:[%s360_s1 + $0x18] sm:$0xff]  ;;  %v20_v8 = vld [vmem:[%s360_s1 + $0x20] sm:$0xff]  ;;  %v21_v9 = vld [vmem:[%s360_s1 + $0x28] sm:$0xff] }
   0x3   :  { %v213_v7 = vpack.c.bf16 %v19_v5, %v18_v2 }
   0x4   :  { %211 = vmatpush3.bf16.msra.mxu0 %v210_v4 }
   0x5   :  { %212 = vmatprep.subr.bf16.mxu0 %v263_v3 }
   0x6   :  { %8 = vsyncpa [#allocation3], 0  ;;  %v216_v10 = vpack.c.bf16 %v21_v9, %v20_v8  ;;  %v22_v11 = vld [vmem:[%s360_s1 + $0x30] sm:$0xff]  ;;  %v23_v12 = vld [vmem:[%s360_s1 + $0x38] sm:$0xff]  ;;  %vm102_vm1 = vcmask 254976   ;;  %v131_v50 = vlaneseq  ;;  %s266_s21 = smov [#allocation2]  }
   0x7   :  { %v219_v13 = vpack.c.bf16 %v23_v12, %v22_v11  ;;  %v24_v14 = vld [vmem:[%s360_s1 + $0x40] sm:$0xff]  ;;  %v25_v15 = vld [vmem:[%s360_s1 + $0x48] sm:$0xff]  ;;  %v26_v17 = vld [vmem:[%s360_s1 + $0x50] sm:$0xff]  ;;  %s149_s22 = sshll.u32 %s266_s21, 4  ;;  %s150_s22 = int_to_ptr.vmem [resolvable:$true] %s149_s22 }
   0x8   :  { %214 = vmatpush3.bf16.msra.mxu0 %v213_v7  ;;  %v222_v16 = vpack.c.bf16 %v25_v15, %v24_v14  ;;  %v27_v18 = vld [vmem:[%s360_s1 + $0x58] sm:$0xff]  ;;  %v28_v20 = vld [vmem:[%s360_s1 + $0x60] sm:$0xff]  ;;  %v29_v21 = vld [vmem:[%s360_s1 + $0x68] sm:$0xff]  ;;  %v132_v51 = vshrl.u32 %v131_v50, 7  ;;  %s239_s23 = scalar_lea.vmem %s150_s22, 32  ;;  %p244_p1 = scmp.lt.s32.totalorder %s150_s22, %s150_s22 }
   0x9   :  { %215 = vmatprep.subr.bf16.mxu0 %v263_v3  ;;  %v225_v19 = vpack.c.bf16 %v27_v18, %v26_v17  ;;  %v228_v22 = vpack.c.bf16 %v29_v21, %v28_v20  ;;  %v30_v23 = vld [vmem:[%s360_s1 + $0x70] sm:$0xff]  ;;  %v31_v24 = vld [vmem:[%s360_s1 + $0x78] sm:$0xff]  ;;  %v15_v26 = vld [vmem:[%s359_s0] sm:$0x3]  ;;  %p240_p0 = scmp.ne.s32.totalorder %s150_s22, %s239_s23  ;;  %p245_p2 = scmp.lt.s32.totalorder %s239_s23, %s239_s23 }
   0xa   :  { %v231_v25 = vpack.c.bf16 %v31_v24, %v30_v23  ;;  %v124_v52 = vld [vmem:[%s361_s2] sm:$0x1]  ;;  %v133_v53 = vsub.s32 0, %v132_v51  ;;  %v128_v56 = vld [vmem:[%s361_s2 + $0x1] sm:$0x1] }
   0xb   :  { %p246_p3 = por %p245_p2, %p244_p1 }
   0xc   :  { %217 = vmatpush3.bf16.msra.mxu0 %v216_v10 }
   0xd   :  { %218 = vmatprep.subr.bf16.mxu0 %v263_v3  ;;  %p247_p4 = pnand %p246_p3, %p240_p0 }
  0x10   :  { %220 = vmatpush3.bf16.msra.mxu0 %v219_v13 }
  0x11   :  { %221 = vmatprep.subr.bf16.mxu0 %v263_v3 }
  0x14   :  { %223 = vmatpush3.bf16.msra.mxu0 %v222_v16 }
  0x15   :  { %224 = vmatprep.subr.bf16.mxu0 %v263_v3 }
  0x18   :  { %226 = vmatpush3.bf16.msra.mxu0 %v225_v19 }
  0x19   :  { %227 = vmatprep.subr.bf16.mxu0 %v263_v3 }
  0x1c   :  { %229 = vmatpush3.bf16.msra.mxu0 %v228_v22 }
  0x1d   :  { %230 = vmatprep.subr.bf16.mxu0 %v263_v3 }
  0x20   :  { %232 = vmatpush3.bf16.msra.mxu0 %v231_v25 }
  0x23   :  { %207 = vmatmul.mubr.f32.vlgmr.msra.gmra.mrb[0].mxu0 %v15_v26 }
  0xf6   :  { %v98_v27 = vpop.f32.mrb[0].mxu0 }
  0xf7   :  { %v103_v28 = vsel %vm102_vm1, %v98_v27, 0.0  ;;  %v112_v29 = vmul.f32 %v98_v27, %v98_v27  ;;  %v208_v30 = vpop.f32.mrb[1].mxu0 }
  0xf8   :  { %v104_v31 = vrot.slane %v103_v28, 4 }
  0xf9   :  { %v113_v32 = vsel %vm102_vm1, %v112_v29, 0.0 }
  0xfa   :  { %v105_v33 = vadd.f32 %v104_v31, %v103_v28  ;;  %v114_v34 = vrot.slane %v113_v32, 4 }
  0xfc   :  { %v106_v35 = vrot.slane %v105_v33, 2  ;;  %v115_v36 = vadd.f32 %v114_v34, %v113_v32 }
  0xfe   :  { %v107_v37 = vadd.f32 %v106_v35, %v105_v33  ;;  %v116_v38 = vrot.slane %v115_v36, 2 }
 0x100   :  { %v108_v39 = vrot.slane %v107_v37, 1  ;;  %v117_v40 = vadd.f32 %v116_v38, %v115_v36 }
 0x102   :  { %v109_v41 = vadd.f32 %v108_v39, %v107_v37  ;;  %v118_v42 = vrot.slane %v117_v40, 1 }
 0x104   :  { %v111_v43 = vmul.f32 0.5, %v109_v41  ;;  %v119_v44 = vadd.f32 %v118_v42, %v117_v40 }
 0x106   :  { %v120_v45 = vmul.f32 0.5, %v119_v44  ;;  %v121_v46 = vmul.f32 %v111_v43, %v111_v43 }
 0x108   :  { %v122_v47 = vsub.f32 %v120_v45, %v121_v46 }
 0x10a   :  { %v123_v48 = vmax.f32 %v122_v47, 0.0 }
 0x10c   :  { %v125_v49 = vadd.f32 1e-05, %v123_v48 }
 0x10e   :  { %237 = vrsqrt.f32 %v125_v49 }
 0x118   :  { %v238_v54 = vpop.eup %237 }
 0x119   :  { %v127_v55 = vmul.f32 %v238_v54, %v124_v52 }
 0x11b   :  { %v129_v57 = vmul.f32 %v127_v55, %v111_v43  ;;  %v134_v58 = vrot.slane %v127_v55, %v133_v53 }
 0x11d   :  { %v130_v59 = vsub.f32 %v128_v56, %v129_v57  ;;  %v135_v60 = vmul.f32 %v134_v58, %v98_v27 }
 0x11f   :  { %v139_v61 = vrot.slane %v130_v59, %v133_v53 }
 0x121   :  { %v140_v62 = vadd.f32 %v139_v61, %v135_v60 }
 0x123   :  { %v141_v63 = vmax.f32 %v140_v62, 0.0 }
 0x125   :  { %142 = vst.msk [vmem:[#allocation2] sm:$0x3] %vm102_vm1, %v141_v63 }
 0x126   :  { %250 = shalt.err (!%p247_p4)
}
 0x127   :  { %s251_s25 = scalar_lea.hbm %s362_s3, 32 }
 0x128   :  { %p252_p5 = scmp.ne.s32.totalorder %s362_s3, %s251_s25  ;;  %p255_p6 = scmp.lt.u32.totalorder %s251_s25, %s362_s3 }
 0x12a   :  { %p257_p7 = pnand %p255_p6, %p252_p5 }
 0x12c   :  { %260 = shalt.err (!%p257_p7)
}
 0x12d   :  { %152 = dma.vmem_to_hbm [thread:$0]  %s150_s22, 32, %s362_s3, [#allocation3]  }
 0x12e   :  { %261 = dma.done.wait [#allocation3], 32  }
 0x12f   :  { %262 = vsyncadd [#allocation3], 4294967264 }
 0x130   :  { %156 = vsyncpa [#allocation3], 1 }

</bundles_post_ra>
